<compile_context>
chip_gen: v7x
topology: tpu7x:2x2x1
jax: 0.10.0
libtpu: 0.0.40
codegen_flags: <defaults>
</compile_context>

<pallas_src>
import math

import jax
import jax.numpy as jnp
from jax.experimental import pallas as pl
from jax.experimental.pallas import tpu as pltpu


def _round_up(n, m):
    return (n + m - 1) // m * m


def _patch_embed_kernel(x_ref, w_ref, b_ref, o_ref):
    # x_ref: (tm, K) bf16 tile of patch tokens
    # w_ref: (K, N)  bf16 resident weight (pre-transposed: in x out)
    # b_ref: (1, N)  f32 resident bias
    acc = jnp.dot(x_ref[...], w_ref[...],
                  preferred_element_type=jnp.float32)        # MXU, f32 accum
    o_ref[...] = (acc + b_ref[...]).astype(o_ref.dtype)


def linear_patch_embedding(x, w, b, *, patch=14, tile_m=1024,
                           compute_dtype=jnp.bfloat16,
                           out_dtype=jnp.bfloat16):
    """x: (B, C, H*patch, W*patch); w: (C*patch*patch, N) pre-transposed; b: (1, N) or (N,).

    Returns (B, H*W, N) in out_dtype (bf16 by default — what the downstream
    encoder block consumes; pass out_dtype=jnp.float32 for full-precision out).
    """
    B, C, HP, WP = x.shape
    h, wn = HP // patch, WP // patch
    K = C * patch * patch
    N = w.shape[1]
    assert w.shape[0] == K, "linear in_features must equal C*patch*patch"

    # ---- patchify (layout plumbing, wrapper-side) ------------------------------
    # Cast FIRST so the transpose fusion materializes the token slab in bf16.
    tokens = (x.astype(compute_dtype)
               .reshape(B, C, h, patch, wn, patch)
               .transpose(0, 2, 4, 1, 3, 5)
               .reshape(B * h * wn, K))                       # (M, K) bf16
    M = tokens.shape[0]

    # Tile rows: as large as possible (fewer ~0.35 us grid steps), but keep at
    # least 2 grid steps so the "parallel" axis feeds both v7x TensorCores.
    # Multiple of 16 for bf16 sublane packing.
    tm = min(_round_up(tile_m, 16), _round_up(pl.cdiv(M, 2), 16))
    tm = max(tm, 16)
    grid_m = pl.cdiv(M, tm)    # ragged last block handled by Pallas (no jnp.pad)

    # Params are expected pre-cast; these casts are no-ops in that case.
    w_c = w if w.dtype == compute_dtype else w.astype(compute_dtype)
    b_c = jnp.asarray(b, jnp.float32).reshape(1, N)

    flops = 2 * M * K * N
    bytes_accessed = (tokens.size * tokens.dtype.itemsize
                      + w_c.size * w_c.dtype.itemsize
                      + b_c.size * b_c.dtype.itemsize
                      + M * N * jnp.dtype(out_dtype).itemsize)

    out = pl.pallas_call(
        _patch_embed_kernel,
        out_shape=jax.ShapeDtypeStruct((M, N), out_dtype),
        grid_spec=pltpu.PrefetchScalarGridSpec(
            num_scalar_prefetch=0,
            grid=(grid_m,),
            in_specs=[
                pl.BlockSpec((tm, K), lambda i: (i, 0)),      # token tile
                pl.BlockSpec((K, N), lambda i: (0, 0)),       # resident weight
                pl.BlockSpec((1, N), lambda i: (0, 0)),       # resident bias
            ],
            out_specs=pl.BlockSpec((tm, N), lambda i: (i, 0)),
        ),
        compiler_params=pltpu.CompilerParams(
            dimension_semantics=("parallel",)),               # shard M across TCs (v7x)
        cost_estimate=pl.CostEstimate(
            flops=flops, transcendentals=0, bytes_accessed=bytes_accessed),
    )(tokens, w_c, b_c)

    return out.reshape(B, h * wn, N)


def linear_patch_embedding_ref(x, w, b, patch=14):
    """Pure-JAX f32 reference matching the PyTorch forward exactly."""
    B, C, HP, WP = x.shape
    h, wn = HP // patch, WP // patch
    xp = x.reshape(B, C, h, patch, wn, patch).transpose(0, 2, 4, 1, 3, 5)
    tokens = xp.reshape(B, h * wn, C * patch * patch)
    return tokens @ w + b


if __name__ == "__main__":
    # Small shapes consistent with the module: Linear(588, 1152) forces C=3,
    # patch=14; spatial 56x56 -> 4x4 = 16 patches per image, 32 tokens total.
    B, C = 2, 3
    HP = WP = 56
    PATCH = 14
    K = C * PATCH * PATCH        # 588
    N_OUT = 1152

    key = jax.random.PRNGKey(0)
    kx, kw, kb = jax.random.split(key, 3)
    x = jax.random.normal(kx, (B, C, HP, WP), jnp.float32)
    # nn.Linear-style init; weight stored pre-transposed as (in, out).
    bound = 1.0 / math.sqrt(K)
    w_f32 = jax.random.uniform(kw, (K, N_OUT), jnp.float32, -bound, bound)
    b_f32 = jax.random.uniform(kb, (1, N_OUT), jnp.float32, -bound, bound)

    # Parameters stored once in the kernel's compute dtypes (no per-call cast).
    w_bf16 = w_f32.astype(jnp.bfloat16)

    out = linear_patch_embedding(x, w_bf16, b_f32)   # tm=16 here -> 2 grid steps
    out = jax.block_until_ready(out)

    n_patches = (HP // PATCH) * (WP // PATCH)
    assert out.shape == (B, n_patches, N_OUT)
    assert out.dtype == jnp.bfloat16

    out_f32 = out.astype(jnp.float32)
    assert bool(jnp.all(jnp.isfinite(out_f32)))

    ref = linear_patch_embedding_ref(x, w_f32, b_f32)
    # bf16 matmul operands + bf16 output with f32 accumulation -> ~1e-2 tolerance.
    max_err = float(jnp.max(jnp.abs(out_f32 - ref)))
    assert bool(jnp.allclose(out_f32, ref, rtol=2e-2, atol=2e-2)), \
        f"mismatch, max_err={max_err}"

    print("KERNEL_OK")
</pallas_src>

<mosaic_0001>
module attributes {stable_mosaic.version = 11 : i64} {
  func.func @_patch_embed_kernel(%arg0: i32, %arg1: memref<16x588xbf16, #tpu.memory_space<vmem>>, %arg2: memref<588x1152xbf16, #tpu.memory_space<vmem>>, %arg3: memref<1x1152xf32, #tpu.memory_space<vmem>>, %arg4: memref<16x1152xbf16, #tpu.memory_space<vmem>>) attributes {dimension_semantics = [#tpu.dimension_semantics<parallel>], iteration_bounds = array<i64: 2>, scalar_prefetch = 0 : i64, scratch_operands = 0 : i64, tpu.core_type = #tpu.core_type<tc>, window_params = [{transform_indices = @transform_0, window_bounds = array<i64: 16, 588>}, {pipeline_mode = #tpu.pipeline_mode<synchronous>, transform_indices = @transform_1, window_bounds = array<i64: 588, 1152>}, {pipeline_mode = #tpu.pipeline_mode<synchronous>, transform_indices = @transform_2, window_bounds = array<i64: 1, 1152>}, {transform_indices = @transform_3, window_bounds = array<i64: 16, 1152>}]} {
    %c0 = arith.constant 0 : index
    %c0_0 = arith.constant 0 : index
    %0 = vector.load %arg1[%c0, %c0_0] : memref<16x588xbf16, #tpu.memory_space<vmem>>, vector<16x588xbf16>
    %c0_1 = arith.constant 0 : index
    %c0_2 = arith.constant 0 : index
    %1 = vector.load %arg2[%c0_1, %c0_2] : memref<588x1152xbf16, #tpu.memory_space<vmem>>, vector<588x1152xbf16>
    %cst = arith.constant dense<0.000000e+00> : vector<16x1152xf32>
    %2 = tpu.matmul %0, %1, %cst {dimension_numbers = #tpu.dot_dimension_numbers<[1], [0], [0], [1], [0, 0, 1, 1], [], []>} : vector<16x588xbf16>, vector<588x1152xbf16>, vector<16x1152xf32> -> vector<16x1152xf32>
    %c0_3 = arith.constant 0 : index
    %c0_4 = arith.constant 0 : index
    %3 = vector.load %arg3[%c0_3, %c0_4] : memref<1x1152xf32, #tpu.memory_space<vmem>>, vector<1x1152xf32>
    %4 = vector.broadcast %3 : vector<1x1152xf32> to vector<16x1152xf32>
    %5 = arith.addf %2, %4 : vector<16x1152xf32>
    %6 = arith.truncf %5 : vector<16x1152xf32> to vector<16x1152xbf16>
    %c0_5 = arith.constant 0 : index
    %c0_6 = arith.constant 0 : index
    %7 = vector.load %arg4[%c0_5, %c0_6] : memref<16x1152xbf16, #tpu.memory_space<vmem>>, vector<16x1152xbf16>
    tpu.vector_store %arg4[%c0_5, %c0_6], %6 {strides = array<i32>} : memref<16x1152xbf16, #tpu.memory_space<vmem>>, vector<16x1152xbf16>,
    return
  }
  func.func @transform_0(%arg0: i32) -> (i32, i32) {
    %c0_i32 = arith.constant 0 : i32
    %c0_i32_0 = arith.constant 0 : i32
    return %arg0, %c0_i32 : i32, i32
  }
  func.func @transform_1(%arg0: i32) -> (i32, i32) {
    %c0_i32 = arith.constant 0 : i32
    %c0_i32_0 = arith.constant 0 : i32
    %c0_i32_1 = arith.constant 0 : i32
    return %c0_i32, %c0_i32_0 : i32, i32
  }
  func.func @transform_2(%arg0: i32) -> (i32, i32) {
    %c0_i32 = arith.constant 0 : i32
    %c0_i32_0 = arith.constant 0 : i32
    %c0_i32_1 = arith.constant 0 : i32
    return %c0_i32, %c0_i32_0 : i32, i32
  }
  func.func @transform_3(%arg0: i32) -> (i32, i32) {
    %c0_i32 = arith.constant 0 : i32
    %c0_i32_0 = arith.constant 0 : i32
    return %arg0, %c0_i32 : i32, i32
  }
}

</mosaic_0001>

<bundles_post_ra>
// kernel: tpu_custom_call.1
= control target key start
LH: loop header
LB: loop body
LE: loop exit
PB: predicated region body
PF: predicated region fallthrough
CT: control target
= control target key end

     0   :  { %8 = vsyncpa [#allocation3], 0  ;;  %s4776_s0 = inlined_call_operand.hbm [shape: bf16[32,588], index: 0, kind: input, shape index: {}]   ;;  %s4777_s1 = inlined_call_operand.hbm [shape: bf16[588,1152], index: 1, kind: input, shape index: {}]   ;;  %s4778_s2 = inlined_call_operand.hbm [shape: f32[1,1152], index: 2, kind: input, shape index: {}]   ;;  %s4779_s3 = inlined_call_operand.hbm [shape: bf16[32,1152], index: 3, kind: output, shape index: {}]  }
   0x1   :  { %10 = vsyncpa [#allocation3 + $0x1], 0 }
   0x2   :  { %11 = vsyncpa [#allocation6], 0 }
   0x3   :  { %12 = vsyncpa [#allocation4], 0 }
   0x4   :  { %14 = vsyncpa [#allocation4 + $0x1], 0  ;;  %s4468_s12 = smov 0   ;;  %s4470_s13 = smov 0  }
   0x5   :  { %s4472_s14 = smov 0   ;;  %s4474_s15 = smov 0  }
   0x6 LB: > { %s4489_s16 = sadd.s32 4294967295, %s4433_s15   ;;  %s3207_s17 = sadd.s32 4294967294, %s4433_s15   ;;  %s4433_s15 = sphi %s4474_s15, %s4799_s15   ;;  %s4429_s14 = sphi %s4472_s14, %s4798_s14   ;;  %s4425_s13 = sphi %s4470_s13, %s4797_s13   ;;  %s4421_s12 = sphi %s4468_s12, %s4796_s12  }
   0x7   : > { %p40_p0 = scmp.ne.s32.totalorder %s4425_s13, %s4421_s12  ;;  %p4780_p1 = scmp.eq.s32.totalorder %s4489_s16, 0 }
   0x8   : > { %p112_p3 = scmp.eq.s32.totalorder %s3207_s17, 1  ;;  %p3208_p5 = scmp.ge.s32.totalorder %s4433_s15, 1 }
   0x9   : > { %p4498_p4 = por %p4780_p1, %p40_p0  ;;  %p119_p7 = scmp.lt.s32.totalorder %s4433_s15, 3 }
   0xa   : > { %p4503_p6 = por %p112_p3, %p40_p0  ;;  %s4435_s21 = smov [#allocation5]  }
   0xb   : > { %s4783_s18 = scalar_select %p4498_p4, 1, 0 }
   0xc   : > { %s4784_s19 = scalar_select %p4503_p6, 1, 0 }
   0xd   : > { %p4508_p8 = pnand %p3208_p5, %p119_p7  ;;  %s131_s22 = sshll.u32 %s4435_s21, 4  ;;  %s4512_s22 = int_to_ptr.vmem [resolvable:$true] %s131_s22 }
   0xe   : > { %s4436_s24 = smov [#allocation7]   ;;  %s4277_s28 = scalar_lea.hbm %s4777_s1, 42624 }
   0xf   : > { %p3720_p9 = pneg %p4508_p8  ;;  %s145_s25 = sshll.u32 %s4436_s24, 4  ;;  %s4523_s25 = int_to_ptr.vmem [resolvable:$true] %s145_s25 }
  0x10   : > { %p4278_p12 = scmp.ne.s32.totalorder %s4777_s1, %s4277_s28  ;;  %p4284_p5 = scmp.lt.u32.totalorder %s4277_s28, %s4777_s1 }
  0x11   : > { %p4519_p11 = pnand %p3720_p9, %p4780_p1 }
  0x13   : > { %p4279_p13 = pneg %p4519_p11 }
  0x15   : > { %p4280_p0 = pnand %p4279_p13, %p4278_p12 }
  0x17   : > { %p4281_p3 = pneg %p4280_p0 }
  0x19   : > { %p4286_p7 = pnand %p4284_p5, %p4281_p3 }
  0x1b   : > { %4289 = shalt.err (!%p4286_p7)
}
  0x1c   : > { %s4290_s6 = scalar_lea.vmem %s4512_s22, 42624  ;;  %p4298_p2 = scmp.lt.s32.totalorder %s4512_s22, %s4512_s22 }
  0x1d   : > { %p4291_p9 = scmp.ne.s32.totalorder %s4512_s22, %s4290_s6  ;;  %p4299_p12 = scmp.lt.s32.totalorder %s4290_s6, %s4290_s6 }
  0x1f   : > { %p4293_p10 = pnand %p4291_p9, %p4279_p13  ;;  %p4300_p0 = por %p4299_p12, %p4298_p2 }
  0x21   : > { %p4294_p1 = pneg %p4293_p10 }
  0x23   : > { %p4301_p6 = pnand %p4300_p0, %p4294_p1 }
  0x25   : > { %4304 = shalt.err (!%p4301_p6)
}
  0x26   : > { %s4437_s7 = smov 576   ;;  %s4438_s8 = smov 36  }
  0x27   : > { %3723 = dma.hbm_to_vmem [thread:$0]  (!%p4519_p11), %s4777_s1, 42624, %s4512_s22, [#allocation6], %s4437_s7, %s4437_s7, %s4438_s8  }
  0x28   : > { %s4305_s21 = scalar_lea.hbm %s4778_s2, 144 }
  0x29   : > { %p4306_p2 = scmp.ne.s32.totalorder %s4778_s2, %s4305_s21  ;;  %p4312_p10 = scmp.lt.u32.totalorder %s4305_s21, %s4778_s2 }
  0x2b   : > { %p4308_p1 = pnand %p4306_p2, %p4279_p13 }
  0x2d   : > { %p4309_p6 = pneg %p4308_p1 }
  0x2f   : > { %p4314_p3 = pnand %p4312_p10, %p4309_p6 }
  0x31   : > { %4317 = shalt.err (!%p4314_p3)
}
  0x32   : > { %s4318_s22 = scalar_lea.vmem %s4523_s25, 144  ;;  %s4325_s29 = scalar_lea.vmem %s4523_s25, 160 }
  0x33   : > { %p4319_p5 = scmp.ne.s32.totalorder %s4523_s25, %s4318_s22  ;;  %p4326_p12 = scmp.lt.s32.totalorder %s4523_s25, %s4523_s25 }
  0x34   : > { %p4327_p0 = scmp.lt.s32.totalorder %s4325_s29, %s4318_s22 }
  0x35   : > { %p4321_p7 = pnand %p4319_p5, %p4279_p13 }
  0x36   : > { %p4328_p2 = por %p4327_p0, %p4326_p12 }
  0x37   : > { %p4322_p9 = pneg %p4321_p7 }
  0x39   : > { %p4329_p1 = pnand %p4328_p2, %p4322_p9 }
  0x3b   : > { %4332 = shalt.err (!%p4329_p1)
}
  0x3c   : > { %3726 = dma.hbm_to_vmem [thread:$0]  (!%p4519_p11), %s4778_s2, 144, %s4523_s25, [#allocation6]  }
  0x3d   : > { %s4579_s5 = sadd.s32 1, %s4433_s15   ;;  %s27_s23 = sadd.s32 1, %s4429_s14 }
  0x3e   : > { %s24_s6 = ssub.s32 %s4433_s15, %s4579_s5  ;;  %p34_p13 = scmp.ne.s32.totalorder %s4429_s14, %s4425_s13 }
  0x3f   : > { %p25_p6 = scmp.eq.s32.totalorder %s24_s6, 0  ;;  %p35_p10 = scmp.eq.s32.totalorder %s4433_s15, 0 }
  0x40   : > { %p4787_p3 = scmp.eq.s32.totalorder %s4489_s16, 1  ;;  %p3737_p7 = scmp.lt.s32.totalorder %s4433_s15, 2 }
  0x41   : > { %s4595_s8 = scalar_select %p25_p6, %s4429_s14, %s27_s23  }
  0x42   : > { %p4589_p5 = por %p4787_p3, %p34_p13  ;;  %p36_p9 = por %p35_p10, %p34_p13 }
  0x43   : > { %s156_s9 = sand.u32 1, %s4429_s14   ;;  %s3704_s25 = smul.u32 640, %s4433_s15 }
  0x44   : > { %s4788_s7 = scalar_select %p4589_p5, 1, 0 }
  0x45   : > { %s3703_s10 = smul.u32 40, %s156_s9  ;;  %p4599_p11 = pnand %p3737_p7, %p36_p9 }
  0x46   : > { %s4606_s24 = scalar_lea.hbm %s4776_s0, %s3704_s25  ;;  %s4610_s28 = scalar_lea.sflag [#allocation3], %s156_s9 }
  0x47   : > { %s160_s26 = scalar_lea.vmem [#allocation2], %s3703_s10  ;;  %s4333_s22 = scalar_lea.hbm %s4606_s24, 640 }
  0x48   : > { %s168_s27 = sshll.u32 %s160_s26, 4  ;;  %p4334_p12 = scmp.ne.s32.totalorder %s4606_s24, %s4333_s22  ;;  %s4608_s27 = int_to_ptr.vmem [resolvable:$true] %s168_s27 }
  0x49   : > { %p4335_p0 = pneg %p4599_p11  ;;  %s4338_s4 = scalar_lea.hbm %s4776_s0, 1280 }
  0x4a   : > { %p4339_p13 = scmp.lt.u32.totalorder %s4606_s24, %s4776_s0  ;;  %p4340_p6 = scmp.lt.u32.totalorder %s4338_s4, %s4333_s22 }
  0x4b   : > { %p4336_p2 = pnand %p4335_p0, %p4334_p12  ;;  %p4342_p3 = scmp.lt.u32.totalorder %s4333_s22, %s4606_s24 }
  0x4c   : > { %p4341_p10 = por %p4340_p6, %p4339_p13 }
  0x4d   : > { %p4337_p1 = pneg %p4336_p2 }
  0x4e   : > { %p4343_p7 = por %p4342_p3, %p4341_p10 }
  0x50   : > { %p4344_p9 = pnand %p4343_p7, %p4337_p1 }
  0x52   : > { %4347 = shalt.err (!%p4344_p9)
}
  0x53   : > { %s4348_s9 = scalar_lea.vmem %s4608_s27, 640  ;;  %s4439_s10 = smov [#allocation2]  }
  0x54   : > { %p4349_p12 = scmp.ne.s32.totalorder %s4608_s27, %s4348_s9  ;;  %s4353_s25 = sshll.u32 %s4439_s10, 4  ;;  %s4354_s25 = int_to_ptr.vmem [resolvable:$false] %s4353_s25 }
  0x55   : > { %s4355_s17 = scalar_lea.vmem %s4354_s25, 1280  ;;  %p4356_p4 = scmp.lt.s32.totalorder %s4608_s27, %s4354_s25 }
  0x56   : > { %p4351_p2 = pnand %p4349_p12, %p4335_p0  ;;  %p4357_p13 = scmp.lt.s32.totalorder %s4355_s17, %s4348_s9 }
  0x58   : > { %p4352_p5 = pneg %p4351_p2  ;;  %p4358_p6 = por %p4357_p13, %p4356_p4 }
  0x5a   : > { %p4359_p10 = pnand %p4358_p6, %p4352_p5 }
  0x5c   : > { %4362 = shalt.err (!%p4359_p10)
}
  0x5d   : > { %s4440_s21 = smov 320   ;;  %s4441_s26 = smov 20  }
  0x5e   : > { %3730 = dma.hbm_to_vmem [thread:$0]  (!%p4599_p11), %s4606_s24, 640, %s4608_s27, %s4610_s28, %s4440_s21, %s4440_s21, %s4441_s26  }
  0x5f   : > { %180 = sbr.rel (%p4508_p8) target bundleno = 688 (0x2b0), region = 32  ;;  %s4641_s22 = sand.u32 (!%p4508_p8), 1, %s4425_s13  }
  0x60   : > { %s3705_s29 = smul.u32 (!%p4508_p8), 40, %s4641_s22  ;;  %s183_s30 = scalar_lea.sflag (!%p4508_p8), [#allocation3], %s4641_s22 }
  0x61   : > { %p4790_p4 = scmp.ne.s32.totalorder (!%p4508_p8), %s4783_s18, 0 }
  0x62   : > { %s4645_s4 = scalar_lea.vmem (!%p4508_p8), [#allocation2], %s3705_s29 }
  0x66   : > { %4408 = dma.done.wait (%p4790_p4), %s183_s30, 640  }
  0x67   : > { %4410 = vsyncadd (%p4790_p4), %s183_s30, 4294966656  ;;  %p4791_p5 = scmp.eq.s32.totalorder %s4489_s16, 0 }
  0x69   : > { %4412 = dma.done.wait (%p4791_p5), [#allocation6], 42768   ;;  %p4792_p8 = pmov %p4791_p5 }
  0x6a   : > { %v3784_v0 = vld [vmem:[#allocation5 + $0x4] ss:$36 sps:$4 sm:$0xff]   ;;  %v3786_v1 = vld [vmem:[#allocation5 + $0xc] ss:$36 sps:$4 sm:$0xff]   ;;  %v3792_v5 = vld [vmem:[#allocation5 + $0x54] ss:$36 sps:$4 sm:$0xff]  }
  0x6b   : > { %4414 = vsyncadd (%p4792_p8), [#allocation6], 4294924528  ;;  %2395 = vmatprep.subr.bf16.mxu0 %v3784_v0  ;;  %v3788_v2 = vld [vmem:[#allocation5] ss:$36 sps:$4 sm:$0xff]   ;;  %v3789_v3 = vld [vmem:[#allocation5 + $0x8] ss:$36 sps:$4 sm:$0xff]   ;;  %2524 = vmatprep.subr.bf16.mxu1 %v3786_v1 }
  0x6c   : > { %v3790_v4 = vld [vmem:[#allocation5 + $0x4c] ss:$36 sps:$4 sm:$0xff]   ;;  %2396 = vmatpush1.bf16.msra.mxu0 %v3788_v2  ;;  %2525 = vmatpush1.bf16.msra.mxu1 %v3789_v3  ;;  %v3796_v8 = vld [vmem:[#allocation5 + $0x94] ss:$36 sps:$4 sm:$0xff]   ;;  %v3798_v9 = vld [vmem:[#allocation5 + $0x9c] ss:$36 sps:$4 sm:$0xff]  }
  0x6d   : > { %v3794_v6 = vld [vmem:[#allocation5 + $0x48] ss:$36 sps:$4 sm:$0xff]   ;;  %2397 = vmatprep.subr.bf16.mxu0 %v3790_v4  ;;  %v3795_v7 = vld [vmem:[#allocation5 + $0x50] ss:$36 sps:$4 sm:$0xff]   ;;  %2526 = vmatprep.subr.bf16.mxu1 %v3792_v5  ;;  %v3801_v11 = vld [vmem:[#allocation5 + $0x98] ss:$36 sps:$4 sm:$0xff]  }
  0x6e   : > { %v3800_v10 = vld [vmem:[#allocation5 + $0x90] ss:$36 sps:$4 sm:$0xff]   ;;  %v3802_v12 = vld [vmem:[#allocation5 + $0xdc] ss:$36 sps:$4 sm:$0xff]   ;;  %v3804_v13 = vld [vmem:[#allocation5 + $0xe4] ss:$36 sps:$4 sm:$0xff]  }
  0x6f   : > { %v3806_v14 = vld [vmem:[#allocation5 + $0xd8] ss:$36 sps:$4 sm:$0xff]   ;;  %v3807_v15 = vld [vmem:[#allocation5 + $0xe0] ss:$36 sps:$4 sm:$0xff]   ;;  %v3810_v17 = vld [vmem:[#allocation5 + $0x12c] ss:$36 sps:$4 sm:$0xff]  }
  0x70   : > { %2398 = vmatpush1.bf16.msra.mxu0 %v3794_v6  ;;  %2527 = vmatpush1.bf16.msra.mxu1 %v3795_v7  ;;  %v3808_v16 = vld [vmem:[#allocation5 + $0x124] ss:$36 sps:$4 sm:$0xff]   ;;  %v3814_v20 = vld [vmem:[#allocation5 + $0x16c] ss:$36 sps:$4 sm:$0xff]   ;;  %v3816_v21 = vld [vmem:[#allocation5 + $0x174] ss:$36 sps:$4 sm:$0xff]  }
  0x71   : > { %2399 = vmatprep.subr.bf16.mxu0 %v3796_v8  ;;  %2528 = vmatprep.subr.bf16.mxu1 %v3798_v9  ;;  %v3812_v18 = vld [vmem:[#allocation5 + $0x120] ss:$36 sps:$4 sm:$0xff]   ;;  %v3813_v19 = vld [vmem:[#allocation5 + $0x128] ss:$36 sps:$4 sm:$0xff]   ;;  %v3819_v23 = vld [vmem:[#allocation5 + $0x170] ss:$36 sps:$4 sm:$0xff]  }
  0x72   : > { %v3818_v22 = vld [vmem:[#allocation5 + $0x168] ss:$36 sps:$4 sm:$0xff]   ;;  %v3820_v24 = vld [vmem:[#allocation5 + $0x1b4] ss:$36 sps:$4 sm:$0xff]   ;;  %v3822_v25 = vld [vmem:[#allocation5 + $0x1bc] ss:$36 sps:$4 sm:$0xff]  }
  0x73   : > { %v3824_v26 = vld [vmem:[#allocation5 + $0x1b0] ss:$36 sps:$4 sm:$0xff]   ;;  %v3825_v27 = vld [vmem:[#allocation5 + $0x1b8] ss:$36 sps:$4 sm:$0xff]   ;;  %v3828_v29 = vld [vmem:[#allocation5 + $0x204] ss:$36 sps:$4 sm:$0xff]  }
  0x74   : > { %2400 = vmatpush1.bf16.msra.mxu0 %v3800_v10  ;;  %2529 = vmatpush1.bf16.msra.mxu1 %v3801_v11  ;;  %v3826_v28 = vld [vmem:[#allocation5 + $0x1fc] ss:$36 sps:$4 sm:$0xff]   ;;  %v3832_v32 = vld [vmem:[#allocation5 + $0x244] ss:$36 sps:$4 sm:$0xff]   ;;  %v3834_v33 = vld [vmem:[#allocation5 + $0x24c] ss:$36 sps:$4 sm:$0xff]  }
  0x75   : > { %2401 = vmatprep.subr.bf16.mxu0 %v3802_v12  ;;  %2530 = vmatprep.subr.bf16.mxu1 %v3804_v13  ;;  %v3830_v30 = vld [vmem:[#allocation5 + $0x1f8] ss:$36 sps:$4 sm:$0xff]   ;;  %v3831_v31 = vld [vmem:[#allocation5 + $0x200] ss:$36 sps:$4 sm:$0xff]   ;;  %v3837_v35 = vld [vmem:[#allocation5 + $0x248] ss:$36 sps:$4 sm:$0xff]  }
  0x76   : > { %v3836_v34 = vld [vmem:[#allocation5 + $0x240] ss:$36 sps:$4 sm:$0xff]   ;;  %v3838_v36 = vld [vmem:[#allocation5 + $0x28c] ss:$36 sps:$4 sm:$0xff]   ;;  %v3840_v37 = vld [vmem:[#allocation5 + $0x294] ss:$36 sps:$4 sm:$0xff]  }
  0x77   : > { %v3842_v38 = vld [vmem:[#allocation5 + $0x288] ss:$36 sps:$4 sm:$0xff]   ;;  %v3843_v39 = vld [vmem:[#allocation5 + $0x290] ss:$36 sps:$4 sm:$0xff]   ;;  %v3846_v41 = vld [vmem:[#allocation5 + $0x2dc] ss:$36 sps:$4 sm:$0xff]  }
  0x78   : > { %2402 = vmatpush1.bf16.msra.mxu0 %v3806_v14  ;;  %2531 = vmatpush1.bf16.msra.mxu1 %v3807_v15  ;;  %v3844_v40 = vld [vmem:[#allocation5 + $0x2d4] ss:$36 sps:$4 sm:$0xff]   ;;  %v3850_v44 = vld [vmem:[#allocation5 + $0x31c] ss:$36 sps:$4 sm:$0xff]   ;;  %v3852_v45 = vld [vmem:[#allocation5 + $0x324] ss:$36 sps:$4 sm:$0xff]  }
  0x79   : > { %2403 = vmatprep.subr.bf16.mxu0 %v3808_v16  ;;  %2532 = vmatprep.subr.bf16.mxu1 %v3810_v17  ;;  %v3848_v42 = vld [vmem:[#allocation5 + $0x2d0] ss:$36 sps:$4 sm:$0xff]   ;;  %v3849_v43 = vld [vmem:[#allocation5 + $0x2d8] ss:$36 sps:$4 sm:$0xff]   ;;  %v3855_v48 = vld [vmem:[#allocation5 + $0x320] ss:$36 sps:$4 sm:$0xff]  }
  0x7a   : > { %v3854_v46 = vld [vmem:[#allocation5 + $0x318] ss:$36 sps:$4 sm:$0xff]   ;;  %v3856_v49 = vld [vmem:[#allocation5 + $0x364] ss:$36 sps:$4 sm:$0xff]   ;;  %v3858_v50 = vld [vmem:[#allocation5 + $0x36c] ss:$36 sps:$4 sm:$0xff]  }
  0x7b   : > { %v4656_v47 = vld [vmem:[%s4645_s4 + $0x4] ss:$20 sps:$4 sm:$0xff]   ;;  %v3860_v51 = vld [vmem:[#allocation5 + $0x360] ss:$36 sps:$4 sm:$0xff]   ;;  %vm2367_vm0 = vcmask 1045504   ;;  %vm2363_vm1 = vcmask 621568  }
  0x7c   : > { %2404 = vmatpush1.bf16.msra.mxu0 %v3812_v18  ;;  %2533 = vmatpush1.bf16.msra.mxu1 %v3813_v19  ;;  %v3861_v52 = vld [vmem:[#allocation5 + $0x368] ss:$36 sps:$4 sm:$0xff]   ;;  %v3864_v54 = vld [vmem:[#allocation5 + $0x3b4] ss:$36 sps:$4 sm:$0xff]   ;;  %v3870_v58 = vld [vmem:[#allocation5 + $0x3fc] ss:$36 sps:$4 sm:$0xff]  }
  0x7d   : > { %2405 = vmatprep.subr.bf16.mxu0 %v3814_v20  ;;  %2534 = vmatprep.subr.bf16.mxu1 %v3816_v21  ;;  %v3862_v53 = vld [vmem:[#allocation5 + $0x3ac] ss:$36 sps:$4 sm:$0xff]   ;;  %v3868_v57 = vld [vmem:[#allocation5 + $0x3f4] ss:$36 sps:$4 sm:$0xff]   ;;  %v3874_v61 = vld [vmem:[#allocation5 + $0x43c] ss:$36 sps:$4 sm:$0xff]  }
  0x7e   : > { %2427 = vmatprep.mubr.bf16.mxu0 %v4656_v47  ;;  %2556 = vmatprep.mubr.bf16.mxu1 %v4656_v47  ;;  %v3866_v55 = vld [vmem:[#allocation5 + $0x3a8] ss:$36 sps:$4 sm:$0xff]   ;;  %v3867_v56 = vld [vmem:[#allocation5 + $0x3b0] ss:$36 sps:$4 sm:$0xff]   ;;  %v3873_v60 = vld [vmem:[#allocation5 + $0x3f8] ss:$36 sps:$4 sm:$0xff]  }
  0x7f   : > { %v3872_v59 = vld [vmem:[#allocation5 + $0x3f0] ss:$36 sps:$4 sm:$0xff]   ;;  %v3876_v62 = vld [vmem:[#allocation5 + $0x444] ss:$36 sps:$4 sm:$0xff]   ;;  %v3878_v63 = vld [vmem:[#allocation5 + $0x438] ss:$36 sps:$4 sm:$0xff]  }
  0x80   : > { %2406 = vmatpush1.bf16.msra.mxu0 %v3818_v22  ;;  %2535 = vmatpush1.bf16.msra.mxu1 %v3819_v23  ;;  %v3879_v0 = vld [vmem:[#allocation5 + $0x440] ss:$36 sps:$4 sm:$0xff]   ;;  %v3887_v2 = vld [vmem:[#allocation5 + $0x48c] ss:$36 sps:$4 sm:$0xff]   ;;  %v3894_v7 = vld [vmem:[#allocation5 + $0x4d4] ss:$36 sps:$4 sm:$0xff]  }
  0x81   : > { %2407 = vmatprep.subr.bf16.mxu0 %v3820_v24  ;;  %2536 = vmatprep.subr.bf16.mxu1 %v3822_v25  ;;  %v3884_v1 = vld [vmem:[#allocation5 + $0x484] ss:$36 sps:$4 sm:$0xff]   ;;  %v3891_v6 = vld [vmem:[#allocation5 + $0x4cc] ss:$36 sps:$4 sm:$0xff]   ;;  %v3897_v10 = vld [vmem:[#allocation5 + $0x514] ss:$36 sps:$4 sm:$0xff]  }
  0x82   : > { %v3882_v3 = vld [vmem:[#allocation5 + $0x480] ss:$36 sps:$4 sm:$0xff]   ;;  %v3885_v4 = vld [vmem:[#allocation5 + $0x488] ss:$36 sps:$4 sm:$0xff]   ;;  %v3892_v9 = vld [vmem:[#allocation5 + $0x4d0] ss:$36 sps:$4 sm:$0xff]  }
  0x83   : > { %v3888_v5 = vld [vmem:[%s4645_s4] ss:$20 sps:$4 sm:$0xff]   ;;  %v3900_v11 = vld [vmem:[#allocation5 + $0x51c] ss:$36 sps:$4 sm:$0xff]   ;;  %vm4444_vm2 = vmmov 0   ;;  %s3706_s18 = smul.u32 72, %s4641_s22 }
  0x84   : > { %2408 = vmatpush1.bf16.msra.mxu0 %v3824_v26  ;;  %2537 = vmatpush1.bf16.msra.mxu1 %v3825_v27  ;;  %v3889_v8 = vld [vmem:[#allocation5 + $0x4c8] ss:$36 sps:$4 sm:$0xff]   ;;  %v3895_v12 = vld [vmem:[#allocation5 + $0x510] ss:$36 sps:$4 sm:$0xff]   ;;  %v3898_v13 = vld [vmem:[#allocation5 + $0x518] ss:$36 sps:$4 sm:$0xff]  }
  0x85   : > { %2409 = vmatprep.subr.bf16.mxu0 %v3826_v28  ;;  %2538 = vmatprep.subr.bf16.mxu1 %v3828_v29  ;;  %v3903_v14 = vld [vmem:[#allocation5 + $0x55c] ss:$36 sps:$4 sm:$0xff]   ;;  %v3906_v15 = vld [vmem:[#allocation5 + $0x564] ss:$36 sps:$4 sm:$0xff]   ;;  %v3912_v19 = vld [vmem:[#allocation5 + $0x5ac] ss:$36 sps:$4 sm:$0xff]  }
  0x86   : > { %v3901_v16 = vld [vmem:[#allocation5 + $0x558] ss:$36 sps:$4 sm:$0xff]   ;;  %v3904_v17 = vld [vmem:[#allocation5 + $0x560] ss:$36 sps:$4 sm:$0xff]   ;;  %v3910_v21 = vld [vmem:[#allocation5 + $0x5a8] ss:$36 sps:$4 sm:$0xff]  }
  0x87   : > { %v3909_v18 = vld [vmem:[#allocation5 + $0x5a4] ss:$36 sps:$4 sm:$0xff]   ;;  %v3915_v22 = vld [vmem:[#allocation5 + $0x5ec] ss:$36 sps:$4 sm:$0xff]   ;;  %v3918_v23 = vld [vmem:[#allocation5 + $0x5f4] ss:$36 sps:$4 sm:$0xff]  }
  0x88   : > { %2410 = vmatpush1.bf16.msra.mxu0 %v3830_v30  ;;  %2539 = vmatpush1.bf16.msra.mxu1 %v3831_v31  ;;  %v3907_v20 = vld [vmem:[#allocation5 + $0x5a0] ss:$36 sps:$4 sm:$0xff]   ;;  %v3913_v24 = vld [vmem:[#allocation5 + $0x5e8] ss:$36 sps:$4 sm:$0xff]   ;;  %v3916_v25 = vld [vmem:[#allocation5 + $0x5f0] ss:$36 sps:$4 sm:$0xff]  }
  0x89   : > { %2411 = vmatprep.subr.bf16.mxu0 %v3832_v32  ;;  %2540 = vmatprep.subr.bf16.mxu1 %v3834_v33  ;;  %v3921_v26 = vld [vmem:[#allocation5 + $0x634] ss:$36 sps:$4 sm:$0xff]   ;;  %v3924_v27 = vld [vmem:[#allocation5 + $0x63c] ss:$36 sps:$4 sm:$0xff]   ;;  %v3930_v32 = vld [vmem:[#allocation5 + $0x684] ss:$36 sps:$4 sm:$0xff]  }
  0x8a   : > { %v3919_v28 = vld [vmem:[#allocation5 + $0x630] ss:$36 sps:$4 sm:$0xff]   ;;  %v3922_v30 = vld [vmem:[#allocation5 + $0x638] ss:$36 sps:$4 sm:$0xff]   ;;  %s4713_s20 = scalar_lea.vmem [#allocation8], %s3706_s18  ;;  %s3707_s11 = smul.u32 1152, %s4489_s16 }
  0x8b   : > { %v4662_v29 = vld [vmem:[%s4645_s4 + $0xc] ss:$20 sps:$4 sm:$0xff]   ;;  %s3115_s24 = sshll.u32 %s4713_s20, 4  ;;  %s3101_s16 = scalar_lea.sflag [#allocation4], %s4641_s22  ;;  %s4730_s24 = int_to_ptr.vmem [resolvable:$true] %s3115_s24 }
  0x8c   : > { %2412 = vmatpush1.bf16.msra.mxu0 %v3836_v34  ;;  %2541 = vmatpush1.bf16.msra.mxu1 %v3837_v35  ;;  %v3927_v31 = vld [vmem:[#allocation5 + $0x67c] ss:$36 sps:$4 sm:$0xff]   ;;  %v3933_v35 = vld [vmem:[#allocation5 + $0x6c4] ss:$36 sps:$4 sm:$0xff]   ;;  %s4728_s23 = scalar_lea.hbm %s4779_s3, %s3707_s11  ;;  %s4363_s6 = scalar_lea.vmem %s4730_s24, 1152 }
  0x8d   : > { %2413 = vmatprep.subr.bf16.mxu0 %v3838_v36  ;;  %2542 = vmatprep.subr.bf16.mxu1 %v3840_v37  ;;  %v3925_v33 = vld [vmem:[#allocation5 + $0x678] ss:$36 sps:$4 sm:$0xff]   ;;  %v3928_v34 = vld [vmem:[#allocation5 + $0x680] ss:$36 sps:$4 sm:$0xff]   ;;  %v3936_v36 = vld [vmem:[#allocation5 + $0x6cc] ss:$36 sps:$4 sm:$0xff]   ;;  %p4364_p11 = scmp.ne.s32.totalorder %s4730_s24, %s4363_s6 }
  0x8e   : > { %v3931_v37 = vld [vmem:[#allocation5 + $0x6c0] ss:$36 sps:$4 sm:$0xff]   ;;  %p4793_p0 = scmp.ne.s32.totalorder %s4788_s7, 0  ;;  %s4445_s9 = smov [#allocation8]  }
  0x8f   : > { %s4367_s10 = sshll.u32 %s4445_s9, 4  ;;  %s4368_s10 = int_to_ptr.vmem [resolvable:$false] %s4367_s10 }
  0x90   : > { %2414 = vmatpush1.bf16.msra.mxu0 %v3842_v38  ;;  %2543 = vmatpush1.bf16.msra.mxu1 %v3843_v39  ;;  %v3934_v38 = vld [vmem:[#allocation5 + $0x6c8] ss:$36 sps:$4 sm:$0xff]   ;;  %p4365_p1 = pnand %p4364_p11, %p4793_p0  ;;  %s4369_s25 = scalar_lea.vmem %s4368_s10, 2304 }
  0x91   : > { %2415 = vmatprep.subr.bf16.mxu0 %v3844_v40  ;;  %2544 = vmatprep.subr.bf16.mxu1 %v3846_v41  ;;  %v3939_v39 = vld [vmem:[#allocation5 + $0x70c] ss:$36 sps:$4 sm:$0xff]   ;;  %v3942_v40 = vld [vmem:[#allocation5 + $0x714] ss:$36 sps:$4 sm:$0xff]   ;;  %p4370_p7 = scmp.lt.s32.totalorder %s4730_s24, %s4368_s10  ;;  %p4371_p9 = scmp.lt.s32.totalorder %s4369_s25, %s4363_s6 }
  0x92   : > { %v3937_v41 = vld [vmem:[#allocation5 + $0x708] ss:$36 sps:$4 sm:$0xff]   ;;  %p4366_p3 = pneg %p4365_p1 }
  0x93   : > { %p4372_p12 = por %p4371_p9, %p4370_p7 }
  0x94   : > { %2416 = vmatpush1.bf16.msra.mxu0 %v3848_v42  ;;  %2545 = vmatpush1.bf16.msra.mxu1 %v3849_v43  ;;  %v3940_v42 = vld [vmem:[#allocation5 + $0x710] ss:$36 sps:$4 sm:$0xff]  }
  0x95   : > { %2417 = vmatprep.subr.bf16.mxu0 %v3850_v44  ;;  %2546 = vmatprep.subr.bf16.mxu1 %v3852_v45  ;;  %v3945_v43 = vld [vmem:[#allocation5 + $0x754] ss:$36 sps:$4 sm:$0xff]   ;;  %v3948_v44 = vld [vmem:[#allocation5 + $0x75c] ss:$36 sps:$4 sm:$0xff]   ;;  %p4373_p2 = pnand %p4372_p12, %p4366_p3 }
  0x96   : > { %v3943_v45 = vld [vmem:[#allocation5 + $0x750] ss:$36 sps:$4 sm:$0xff]  }
  0x98   : > { %2418 = vmatpush1.bf16.msra.mxu0 %v3854_v46  ;;  %2547 = vmatpush1.bf16.msra.mxu1 %v3855_v48  ;;  %v3946_v46 = vld [vmem:[#allocation5 + $0x758] ss:$36 sps:$4 sm:$0xff]  }
  0x99   : > { %2419 = vmatprep.subr.bf16.mxu0 %v3856_v49  ;;  %2548 = vmatprep.subr.bf16.mxu1 %v3858_v50  ;;  %v3951_v48 = vld [vmem:[#allocation5 + $0x79c] ss:$36 sps:$4 sm:$0xff]   ;;  %v3954_v49 = vld [vmem:[#allocation5 + $0x7a4] ss:$36 sps:$4 sm:$0xff]  }
  0x9a   : > { %v3949_v50 = vld [vmem:[#allocation5 + $0x798] ss:$36 sps:$4 sm:$0xff]  }
  0x9c   : > { %2420 = vmatpush1.bf16.msra.mxu0 %v3860_v51  ;;  %2549 = vmatpush1.bf16.msra.mxu1 %v3861_v52  ;;  %v3952_v51 = vld [vmem:[#allocation5 + $0x7a0] ss:$36 sps:$4 sm:$0xff]  }
  0x9d   : > { %2421 = vmatprep.subr.bf16.mxu0 %v3862_v53  ;;  %2550 = vmatprep.subr.bf16.mxu1 %v3864_v54  ;;  %v3957_v52 = vld [vmem:[#allocation5 + $0x7e4] ss:$36 sps:$4 sm:$0xff]   ;;  %v3960_v53 = vld [vmem:[#allocation5 + $0x7ec] ss:$36 sps:$4 sm:$0xff]  }
  0x9e   : > { %v3955_v54 = vld [vmem:[#allocation5 + $0x7e0] ss:$36 sps:$4 sm:$0xff]  }
  0xa0   : > { %2422 = vmatpush1.bf16.msra.mxu0 %v3866_v55  ;;  %2551 = vmatpush1.bf16.msra.mxu1 %v3867_v56  ;;  %v3958_v55 = vld [vmem:[#allocation5 + $0x7e8] ss:$36 sps:$4 sm:$0xff]  }
  0xa1   : > { %2423 = vmatprep.subr.bf16.mxu0 %v3868_v57  ;;  %2552 = vmatprep.subr.bf16.mxu1 %v3870_v58  ;;  %v3963_v56 = vld [vmem:[#allocation5 + $0x82c] ss:$36 sps:$4 sm:$0xff]   ;;  %v3966_v57 = vld [vmem:[#allocation5 + $0x834] ss:$36 sps:$4 sm:$0xff]  }
  0xa2   : > { %v3961_v58 = vld [vmem:[#allocation5 + $0x828] ss:$36 sps:$4 sm:$0xff]  }
  0xa4   : > { %2424 = vmatpush1.bf16.msra.mxu0 %v3872_v59  ;;  %2553 = vmatpush1.bf16.msra.mxu1 %v3873_v60  ;;  %v3964_v59 = vld [vmem:[#allocation5 + $0x830] ss:$36 sps:$4 sm:$0xff]  }
  0xa5   : > { %2425 = vmatprep.subr.bf16.mxu0 %v3874_v61  ;;  %2554 = vmatprep.subr.bf16.mxu1 %v3876_v62  ;;  %v3969_v60 = vld [vmem:[#allocation5 + $0x874] ss:$36 sps:$4 sm:$0xff]   ;;  %v3972_v61 = vld [vmem:[#allocation5 + $0x87c] ss:$36 sps:$4 sm:$0xff]  }
  0xa6   : > { %v3967_v62 = vld [vmem:[#allocation5 + $0x870] ss:$36 sps:$4 sm:$0xff]  }
  0xa8   : > { %2426 = vmatpush1.bf16.msra.mxu0 %v3878_v63  ;;  %2555 = vmatpush1.bf16.msra.mxu1 %v3879_v0  ;;  %v3970_v63 = vld [vmem:[#allocation5 + $0x878] ss:$36 sps:$4 sm:$0xff]  }
  0xa9   : > { %2438 = vmatprep.subr.bf16.mxu0 %v3884_v1  ;;  %2567 = vmatprep.subr.bf16.mxu1 %v3887_v2  ;;  %v3975_v0 = vld [vmem:[#allocation5 + $0x8bc] ss:$36 sps:$4 sm:$0xff]   ;;  %v3978_v1 = vld [vmem:[#allocation5 + $0x8c4] ss:$36 sps:$4 sm:$0xff]  }
  0xaa   : > { %v3973_v2 = vld [vmem:[#allocation5 + $0x8b8] ss:$36 sps:$4 sm:$0xff]  }
  0xab   : > { %2428 = vmatmul.mubr.bf16.vlgmr.msra.gmra.mrb[0].mxu0 %v3888_v5  ;;  %2557 = vmatmul.mubr.bf16.vlgmr.msra.gmra.mrb[0].mxu1 %v3888_v5  ;;  %v3986_v5 = vld [vmem:[#allocation5 + $0x90c] ss:$36 sps:$4 sm:$0xff]  }
  0xac   : > { %2439 = vmatpush1.bf16.msra.mxu0 %v3882_v3  ;;  %2568 = vmatpush1.bf16.msra.mxu1 %v3885_v4  ;;  %v3976_v3 = vld [vmem:[#allocation5 + $0x8c0] ss:$36 sps:$4 sm:$0xff]  }
  0xad   : > { %2440 = vmatprep.subr.bf16.mxu0 %v3891_v6  ;;  %2569 = vmatprep.subr.bf16.mxu1 %v3894_v7  ;;  %v3983_v4 = vld [vmem:[#allocation5 + $0x904] ss:$36 sps:$4 sm:$0xff]  }
  0xae   : > { %2470 = vmatprep.mubr.bf16.mxu0 %v4662_v29  ;;  %2599 = vmatprep.mubr.bf16.mxu1 %v4662_v29  ;;  %v3981_v6 = vld [vmem:[#allocation5 + $0x900] ss:$36 sps:$4 sm:$0xff]   ;;  %v3984_v7 = vld [vmem:[#allocation5 + $0x908] ss:$36 sps:$4 sm:$0xff]  }
  0xb0   : > { %2441 = vmatpush1.bf16.msra.mxu0 %v3889_v8  ;;  %2570 = vmatpush1.bf16.msra.mxu1 %v3892_v9  ;;  %v4667_v8 = vld [vmem:[%s4645_s4 + $0x8] ss:$20 sps:$4 sm:$0xff]  }
  0xb1   : > { %2442 = vmatprep.subr.bf16.mxu0 %v3897_v10  ;;  %2571 = vmatprep.subr.bf16.mxu1 %v3900_v11  ;;  %v3990_v9 = vld [vmem:[#allocation5 + $0x94c] ss:$36 sps:$4 sm:$0xff]   ;;  %v3993_v10 = vld [vmem:[#allocation5 + $0x954] ss:$36 sps:$4 sm:$0xff]  }
  0xb2   : > { %v3988_v11 = vld [vmem:[#allocation5 + $0x948] ss:$36 sps:$4 sm:$0xff]  }
  0xb4   : > { %2443 = vmatpush1.bf16.msra.mxu0 %v3895_v12  ;;  %2572 = vmatpush1.bf16.msra.mxu1 %v3898_v13  ;;  %v3991_v12 = vld [vmem:[#allocation5 + $0x950] ss:$36 sps:$4 sm:$0xff]  }
  0xb5   : > { %2444 = vmatprep.subr.bf16.mxu0 %v3903_v14  ;;  %2573 = vmatprep.subr.bf16.mxu1 %v3906_v15  ;;  %v3996_v13 = vld [vmem:[#allocation5 + $0x994] ss:$36 sps:$4 sm:$0xff]   ;;  %v3999_v14 = vld [vmem:[#allocation5 + $0x99c] ss:$36 sps:$4 sm:$0xff]   ;;  %v4442_v15 = vmov 0  }
  0xb8   : > { %2445 = vmatpush1.bf16.msra.mxu0 %v3901_v16  ;;  %2574 = vmatpush1.bf16.msra.mxu1 %v3904_v17  ;;  %v3994_v16 = vld [vmem:[#allocation5 + $0x990] ss:$36 sps:$4 sm:$0xff]   ;;  %v3997_v17 = vld [vmem:[#allocation5 + $0x998] ss:$36 sps:$4 sm:$0xff]  }
  0xb9   : > { %2446 = vmatprep.subr.bf16.mxu0 %v3909_v18  ;;  %2575 = vmatprep.subr.bf16.mxu1 %v3912_v19  ;;  %v4002_v18 = vld [vmem:[#allocation5 + $0x9dc] ss:$36 sps:$4 sm:$0xff]   ;;  %v4005_v19 = vld [vmem:[#allocation5 + $0x9e4] ss:$36 sps:$4 sm:$0xff]  }
  0xbc   : > { %2447 = vmatpush1.bf16.msra.mxu0 %v3907_v20  ;;  %2576 = vmatpush1.bf16.msra.mxu1 %v3910_v21  ;;  %v4000_v20 = vld [vmem:[#allocation5 + $0x9d8] ss:$36 sps:$4 sm:$0xff]   ;;  %v4003_v21 = vld [vmem:[#allocation5 + $0x9e0] ss:$36 sps:$4 sm:$0xff]  }
  0xbd   : > { %2448 = vmatprep.subr.bf16.mxu0 %v3915_v22  ;;  %2577 = vmatprep.subr.bf16.mxu1 %v3918_v23  ;;  %v4006_v22 = vld [vmem:[#allocation5 + $0xa24] ss:$36 sps:$4 sm:$0x3f]   ;;  %v4008_v23 = vld [vmem:[#allocation5 + $0xa2c] ss:$36 sps:$4 sm:$0x3f]  }
  0xc0   : > { %2449 = vmatpush1.bf16.msra.mxu0 %v3913_v24  ;;  %2578 = vmatpush1.bf16.msra.mxu1 %v3916_v25  ;;  %v4010_v24 = vld [vmem:[#allocation5 + $0xa20] ss:$36 sps:$4 sm:$0x3f]   ;;  %v4011_v25 = vld [vmem:[#allocation5 + $0xa28] ss:$36 sps:$4 sm:$0x3f]  }
  0xc1   : > { %2450 = vmatprep.subr.bf16.mxu0 %v3921_v26  ;;  %2579 = vmatprep.subr.bf16.mxu1 %v3924_v27  ;;  %v4015_v26 = vld [vmem:[#allocation5 + $0x14] ss:$36 sps:$4 sm:$0xff]   ;;  %v2369_v27 = vsel %vm2367_vm0, %v4010_v24, 0  ;;  %v4099_v24 = vld [vmem:[#allocation5 + $0x404] ss:$36 sps:$4 sm:$0xff]  }
  0xc4   : > { %2451 = vmatpush1.bf16.msra.mxu0 %v3919_v28  ;;  %2580 = vmatpush1.bf16.msra.mxu1 %v3922_v30  ;;  %v2375_v28 = vsel %vm2367_vm0, %v4011_v25, 0  ;;  %v4018_v30 = vld [vmem:[#allocation5 + $0x1c] ss:$36 sps:$4 sm:$0xff]   ;;  %v4102_v25 = vld [vmem:[#allocation5 + $0x40c] ss:$36 sps:$4 sm:$0xff]  }
  0xc5   : > { %2452 = vmatprep.subr.bf16.mxu0 %v3927_v31  ;;  %2581 = vmatprep.subr.bf16.mxu1 %v3930_v32  ;;  %v4678_v31 = vld [vmem:[%s4645_s4 + $0x10] ss:$20 sps:$4 sm:$0xff]  }
  0xc6   : > { %v4013_v32 = vld [vmem:[#allocation5 + $0x10] ss:$36 sps:$4 sm:$0xff]  }
  0xc8   : > { %2453 = vmatpush1.bf16.msra.mxu0 %v3925_v33  ;;  %2582 = vmatpush1.bf16.msra.mxu1 %v3928_v34  ;;  %v4016_v33 = vld [vmem:[#allocation5 + $0x18] ss:$36 sps:$4 sm:$0xff]  }
  0xc9   : > { %2454 = vmatprep.subr.bf16.mxu0 %v3933_v35  ;;  %2583 = vmatprep.subr.bf16.mxu1 %v3936_v36  ;;  %v4021_v34 = vld [vmem:[#allocation5 + $0x5c] ss:$36 sps:$4 sm:$0xff]   ;;  %v4024_v35 = vld [vmem:[#allocation5 + $0x64] ss:$36 sps:$4 sm:$0xff]  }
  0xca   : > { %v4019_v36 = vld [vmem:[#allocation5 + $0x58] ss:$36 sps:$4 sm:$0xff]  }
  0xcc   : > { %2455 = vmatpush1.bf16.msra.mxu0 %v3931_v37  ;;  %2584 = vmatpush1.bf16.msra.mxu1 %v3934_v38  ;;  %v4022_v37 = vld [vmem:[#allocation5 + $0x60] ss:$36 sps:$4 sm:$0xff]  }
  0xcd   : > { %2456 = vmatprep.subr.bf16.mxu0 %v3939_v39  ;;  %2585 = vmatprep.subr.bf16.mxu1 %v3942_v40  ;;  %v4027_v38 = vld [vmem:[#allocation5 + $0xa4] ss:$36 sps:$4 sm:$0xff]   ;;  %v4030_v39 = vld [vmem:[#allocation5 + $0xac] ss:$36 sps:$4 sm:$0xff]  }
  0xce   : > { %v4025_v40 = vld [vmem:[#allocation5 + $0xa0] ss:$36 sps:$4 sm:$0xff]  }
  0xd0   : > { %2457 = vmatpush1.bf16.msra.mxu0 %v3937_v41  ;;  %2586 = vmatpush1.bf16.msra.mxu1 %v3940_v42  ;;  %v4028_v41 = vld [vmem:[#allocation5 + $0xa8] ss:$36 sps:$4 sm:$0xff]  }
  0xd1   : > { %2458 = vmatprep.subr.bf16.mxu0 %v3945_v43  ;;  %2587 = vmatprep.subr.bf16.mxu1 %v3948_v44  ;;  %v4033_v42 = vld [vmem:[#allocation5 + $0xec] ss:$36 sps:$4 sm:$0xff]   ;;  %v4036_v43 = vld [vmem:[#allocation5 + $0xf4] ss:$36 sps:$4 sm:$0xff]  }
  0xd2   : > { %v4031_v44 = vld [vmem:[#allocation5 + $0xe8] ss:$36 sps:$4 sm:$0xff]  }
  0xd4   : > { %2459 = vmatpush1.bf16.msra.mxu0 %v3943_v45  ;;  %2588 = vmatpush1.bf16.msra.mxu1 %v3946_v46  ;;  %v4034_v45 = vld [vmem:[#allocation5 + $0xf0] ss:$36 sps:$4 sm:$0xff]  }
  0xd5   : > { %2460 = vmatprep.subr.bf16.mxu0 %v3951_v48  ;;  %2589 = vmatprep.subr.bf16.mxu1 %v3954_v49  ;;  %v4039_v46 = vld [vmem:[#allocation5 + $0x134] ss:$36 sps:$4 sm:$0xff]   ;;  %v4042_v48 = vld [vmem:[#allocation5 + $0x13c] ss:$36 sps:$4 sm:$0xff]  }
  0xd6   : > { %v4037_v49 = vld [vmem:[#allocation5 + $0x130] ss:$36 sps:$4 sm:$0xff]  }
  0xd8   : > { %2461 = vmatpush1.bf16.msra.mxu0 %v3949_v50  ;;  %2590 = vmatpush1.bf16.msra.mxu1 %v3952_v51  ;;  %v4040_v50 = vld [vmem:[#allocation5 + $0x138] ss:$36 sps:$4 sm:$0xff]   ;;  %v4048_v51 = vld [vmem:[#allocation5 + $0x184] ss:$36 sps:$4 sm:$0xff]  }
  0xd9   : > { %2462 = vmatprep.subr.bf16.mxu0 %v3957_v52  ;;  %2591 = vmatprep.subr.bf16.mxu1 %v3960_v53  ;;  %v4043_v52 = vld [vmem:[#allocation5 + $0x178] ss:$36 sps:$4 sm:$0xff]   ;;  %v4046_v53 = vld [vmem:[#allocation5 + $0x180] ss:$36 sps:$4 sm:$0xff]  }
  0xdc   : > { %2463 = vmatpush1.bf16.msra.mxu0 %v3955_v54  ;;  %2592 = vmatpush1.bf16.msra.mxu1 %v3958_v55  ;;  %v4051_v54 = vld [vmem:[#allocation5 + $0x1c4] ss:$36 sps:$4 sm:$0xff]   ;;  %v4054_v55 = vld [vmem:[#allocation5 + $0x1cc] ss:$36 sps:$4 sm:$0xff]  }
  0xdd   : > { %2464 = vmatprep.subr.bf16.mxu0 %v3963_v56  ;;  %2593 = vmatprep.subr.bf16.mxu1 %v3966_v57  ;;  %v4049_v56 = vld [vmem:[#allocation5 + $0x1c0] ss:$36 sps:$4 sm:$0xff]   ;;  %v4052_v57 = vld [vmem:[#allocation5 + $0x1c8] ss:$36 sps:$4 sm:$0xff]  }
  0xe0   : > { %2465 = vmatpush1.bf16.msra.mxu0 %v3961_v58  ;;  %2594 = vmatpush1.bf16.msra.mxu1 %v3964_v59  ;;  %v4057_v58 = vld [vmem:[#allocation5 + $0x20c] ss:$36 sps:$4 sm:$0xff]   ;;  %v4060_v59 = vld [vmem:[#allocation5 + $0x214] ss:$36 sps:$4 sm:$0xff]  }
  0xe1   : > { %2466 = vmatprep.subr.bf16.mxu0 %v3969_v60  ;;  %2595 = vmatprep.subr.bf16.mxu1 %v3972_v61  ;;  %v4055_v60 = vld [vmem:[#allocation5 + $0x208] ss:$36 sps:$4 sm:$0xff]   ;;  %v4058_v61 = vld [vmem:[#allocation5 + $0x210] ss:$36 sps:$4 sm:$0xff]  }
  0xe4   : > { %2467 = vmatpush1.bf16.msra.mxu0 %v3967_v62  ;;  %2596 = vmatpush1.bf16.msra.mxu1 %v3970_v63  ;;  %v4063_v62 = vld [vmem:[#allocation5 + $0x254] ss:$36 sps:$4 sm:$0xff]   ;;  %v4066_v63 = vld [vmem:[#allocation5 + $0x25c] ss:$36 sps:$4 sm:$0xff]  }
  0xe5   : > { %2468 = vmatprep.subr.bf16.mxu0 %v3975_v0  ;;  %2597 = vmatprep.subr.bf16.mxu1 %v3978_v1  ;;  %v4061_v0 = vld [vmem:[#allocation5 + $0x250] ss:$36 sps:$4 sm:$0xff]   ;;  %v4064_v1 = vld [vmem:[#allocation5 + $0x258] ss:$36 sps:$4 sm:$0xff]  }
  0xe8   : > { %2469 = vmatpush1.bf16.msra.mxu0 %v3973_v2  ;;  %2598 = vmatpush1.bf16.msra.mxu1 %v3976_v3  ;;  %v4069_v2 = vld [vmem:[#allocation5 + $0x29c] ss:$36 sps:$4 sm:$0xff]   ;;  %v4072_v3 = vld [vmem:[#allocation5 + $0x2a4] ss:$36 sps:$4 sm:$0xff]  }
  0xe9   : > { %2481 = vmatprep.subr.bf16.mxu0 %v3983_v4  ;;  %2610 = vmatprep.subr.bf16.mxu1 %v3986_v5  ;;  %v4067_v4 = vld [vmem:[#allocation5 + $0x298] ss:$36 sps:$4 sm:$0xff]   ;;  %v4070_v5 = vld [vmem:[#allocation5 + $0x2a0] ss:$36 sps:$4 sm:$0xff]  }
  0xeb   : > { %2471 = vmatmul.mubr.bf16.vlgmr.msra.gmra.mrb[0].mxu0 %v4667_v8  ;;  %2600 = vmatmul.mubr.bf16.vlgmr.msra.gmra.mrb[0].mxu1 %v4667_v8 }
  0xec   : > { %2482 = vmatpush1.bf16.msra.mxu0 %v3981_v6  ;;  %2611 = vmatpush1.bf16.msra.mxu1 %v3984_v7  ;;  %v4075_v6 = vld [vmem:[#allocation5 + $0x2e4] ss:$36 sps:$4 sm:$0xff]   ;;  %v4078_v7 = vld [vmem:[#allocation5 + $0x2ec] ss:$36 sps:$4 sm:$0xff]  }
  0xed   : > { %2483 = vmatprep.subr.bf16.mxu0 %v3990_v9  ;;  %2612 = vmatprep.subr.bf16.mxu1 %v3993_v10  ;;  %v4073_v9 = vld [vmem:[#allocation5 + $0x2e0] ss:$36 sps:$4 sm:$0xff]   ;;  %v4076_v10 = vld [vmem:[#allocation5 + $0x2e8] ss:$36 sps:$4 sm:$0xff]  }
  0xee   : > { %2513 = vmatprep.mubr.bf16.mxu0 %v4442_v15  ;;  %2642 = vmatprep.mubr.bf16.mxu1 %v4442_v15 }
  0xf0   : > { %2484 = vmatpush1.bf16.msra.mxu0 %v3988_v11  ;;  %2613 = vmatpush1.bf16.msra.mxu1 %v3991_v12  ;;  %v4081_v11 = vld [vmem:[#allocation5 + $0x32c] ss:$36 sps:$4 sm:$0xff]   ;;  %v4084_v12 = vld [vmem:[#allocation5 + $0x334] ss:$36 sps:$4 sm:$0xff]  }
  0xf1   : > { %2485 = vmatprep.subr.bf16.mxu0 %v3996_v13  ;;  %2614 = vmatprep.subr.bf16.mxu1 %v3999_v14  ;;  %v4079_v13 = vld [vmem:[#allocation5 + $0x328] ss:$36 sps:$4 sm:$0xff]   ;;  %v4082_v14 = vld [vmem:[#allocation5 + $0x330] ss:$36 sps:$4 sm:$0xff]  }
  0xf4   : > { %2486 = vmatpush1.bf16.msra.mxu0 %v3994_v16  ;;  %2615 = vmatpush1.bf16.msra.mxu1 %v3997_v17  ;;  %v4087_v16 = vld [vmem:[#allocation5 + $0x374] ss:$36 sps:$4 sm:$0xff]   ;;  %v4090_v17 = vld [vmem:[#allocation5 + $0x37c] ss:$36 sps:$4 sm:$0xff]  }
  0xf5   : > { %2487 = vmatprep.subr.bf16.mxu0 %v4002_v18  ;;  %2616 = vmatprep.subr.bf16.mxu1 %v4005_v19  ;;  %v4085_v18 = vld [vmem:[#allocation5 + $0x370] ss:$36 sps:$4 sm:$0xff]   ;;  %v4088_v19 = vld [vmem:[#allocation5 + $0x378] ss:$36 sps:$4 sm:$0xff]  }
  0xf8   : > { %2488 = vmatpush1.bf16.msra.mxu0 %v4000_v20  ;;  %2617 = vmatpush1.bf16.msra.mxu1 %v4003_v21  ;;  %v4093_v20 = vld [vmem:[#allocation5 + $0x3bc] ss:$36 sps:$4 sm:$0xff]   ;;  %v4096_v21 = vld [vmem:[#allocation5 + $0x3c4] ss:$36 sps:$4 sm:$0xff]  }
  0xf9   : > { %3557 = vmatprep.subr.msk.bf16.mxu0 %vm2367_vm0, %v4006_v22  ;;  %3559 = vmatprep.subr.msk.bf16.mxu1 %vm2367_vm0, %v4008_v23  ;;  %v4091_v22 = vld [vmem:[#allocation5 + $0x3b8] ss:$36 sps:$4 sm:$0xff]   ;;  %v4094_v23 = vld [vmem:[#allocation5 + $0x3c0] ss:$36 sps:$4 sm:$0xff]  }
  0xfc   : > { %2490 = vmatpush1.bf16.msra.mxu0 %v2369_v27  ;;  %2619 = vmatpush1.bf16.msra.mxu1 %v2375_v28  ;;  %v4100_v27 = vld [vmem:[#allocation5 + $0x408] ss:$36 sps:$4 sm:$0xff]  }
  0xfd   : > { %2653 = vmatprep.subr.bf16.mxu0 %v4015_v26  ;;  %2782 = vmatprep.subr.bf16.mxu1 %v4018_v30  ;;  %v4097_v26 = vld [vmem:[#allocation5 + $0x400] ss:$36 sps:$4 sm:$0xff]   ;;  %v4105_v28 = vld [vmem:[#allocation5 + $0x44c] ss:$36 sps:$4 sm:$0xff]   ;;  %v4108_v30 = vld [vmem:[#allocation5 + $0x454] ss:$36 sps:$4 sm:$0xff]  }
  0xff   : > { %3558 = vmatmul.mubr.msk.bf16.vlgmr.msra.gmra.mrb[0].mxu0 %vm2363_vm1, %v4678_v31  ;;  %3560 = vmatmul.mubr.msk.bf16.vlgmr.msra.gmra.mrb[0].mxu1 %vm2363_vm1, %v4678_v31 }
 0x100   : > { %2654 = vmatpush1.bf16.msra.mxu0 %v4013_v32  ;;  %2783 = vmatpush1.bf16.msra.mxu1 %v4016_v33  ;;  %v4103_v32 = vld [vmem:[#allocation5 + $0x448] ss:$36 sps:$4 sm:$0xff]   ;;  %v4106_v33 = vld [vmem:[#allocation5 + $0x450] ss:$36 sps:$4 sm:$0xff]  }
 0x101   : > { %2655 = vmatprep.subr.bf16.mxu0 %v4021_v34  ;;  %2784 = vmatprep.subr.bf16.mxu1 %v4024_v35  ;;  %v4111_v34 = vld [vmem:[#allocation5 + $0x494] ss:$36 sps:$4 sm:$0xff]   ;;  %v4114_v35 = vld [vmem:[#allocation5 + $0x49c] ss:$36 sps:$4 sm:$0xff]  }
 0x102   : > { %2685 = vmatprep.mubr.bf16.mxu0 %v4656_v47  ;;  %2814 = vmatprep.mubr.bf16.mxu1 %v4656_v47  ;;  %v4045_v47 = vld [vmem:[#allocation5 + $0x17c] ss:$36 sps:$4 sm:$0xff]  }
 0x104   : > { %2656 = vmatpush1.bf16.msra.mxu0 %v4019_v36  ;;  %2785 = vmatpush1.bf16.msra.mxu1 %v4022_v37  ;;  %v4109_v36 = vld [vmem:[#allocation5 + $0x490] ss:$36 sps:$4 sm:$0xff]   ;;  %v4112_v37 = vld [vmem:[#allocation5 + $0x498] ss:$36 sps:$4 sm:$0xff]  }
 0x105   : > { %2657 = vmatprep.subr.bf16.mxu0 %v4027_v38  ;;  %2786 = vmatprep.subr.bf16.mxu1 %v4030_v39  ;;  %v4117_v38 = vld [vmem:[#allocation5 + $0x4dc] ss:$36 sps:$4 sm:$0xff]   ;;  %v4120_v39 = vld [vmem:[#allocation5 + $0x4e4] ss:$36 sps:$4 sm:$0xff]  }
 0x108   : > { %2658 = vmatpush1.bf16.msra.mxu0 %v4025_v40  ;;  %2787 = vmatpush1.bf16.msra.mxu1 %v4028_v41  ;;  %v4115_v40 = vld [vmem:[#allocation5 + $0x4d8] ss:$36 sps:$4 sm:$0xff]  }
 0x109   : > { %2659 = vmatprep.subr.bf16.mxu0 %v4033_v42  ;;  %2788 = vmatprep.subr.bf16.mxu1 %v4036_v43  ;;  %v4687_v41 = vld [vmem:[%s4645_s4] ss:$20 sps:$4 sm:$0xff]  }
 0x10a   : > { %v4118_v42 = vld [vmem:[#allocation5 + $0x4e0] ss:$36 sps:$4 sm:$0xff]  }
 0x10b   : > { %v4123_v43 = vld [vmem:[#allocation5 + $0x524] ss:$36 sps:$4 sm:$0xff]  }
 0x10c   : > { %2660 = vmatpush1.bf16.msra.mxu0 %v4031_v44  ;;  %2789 = vmatpush1.bf16.msra.mxu1 %v4034_v45  ;;  %v4126_v44 = vld [vmem:[#allocation5 + $0x52c] ss:$36 sps:$4 sm:$0xff]   ;;  %v4121_v45 = vld [vmem:[#allocation5 + $0x520] ss:$36 sps:$4 sm:$0xff]  }
 0x10d   : > { %2661 = vmatprep.subr.bf16.mxu0 %v4039_v46  ;;  %2790 = vmatprep.subr.bf16.mxu1 %v4042_v48  ;;  %v4124_v46 = vld [vmem:[#allocation5 + $0x528] ss:$36 sps:$4 sm:$0xff]  }
 0x10e   : > { %v4129_v48 = vld [vmem:[#allocation5 + $0x56c] ss:$36 sps:$4 sm:$0xff]  }
 0x110   : > { %2662 = vmatpush1.bf16.msra.mxu0 %v4037_v49  ;;  %2791 = vmatpush1.bf16.msra.mxu1 %v4040_v50  ;;  %v4132_v49 = vld [vmem:[#allocation5 + $0x574] ss:$36 sps:$4 sm:$0xff]   ;;  %v4127_v50 = vld [vmem:[#allocation5 + $0x568] ss:$36 sps:$4 sm:$0xff]  }
 0x111   : > { %2663 = vmatprep.subr.bf16.mxu0 %v4045_v47  ;;  %2792 = vmatprep.subr.bf16.mxu1 %v4048_v51  ;;  %v4130_v47 = vld [vmem:[#allocation5 + $0x570] ss:$36 sps:$4 sm:$0xff]  }
 0x112   : > { %v4135_v51 = vld [vmem:[#allocation5 + $0x5b4] ss:$36 sps:$4 sm:$0xff]  }
 0x114   : > { %2664 = vmatpush1.bf16.msra.mxu0 %v4043_v52  ;;  %2793 = vmatpush1.bf16.msra.mxu1 %v4046_v53  ;;  %v4138_v52 = vld [vmem:[#allocation5 + $0x5bc] ss:$36 sps:$4 sm:$0xff]   ;;  %v4133_v53 = vld [vmem:[#allocation5 + $0x5b0] ss:$36 sps:$4 sm:$0xff]  }
 0x115   : > { %2665 = vmatprep.subr.bf16.mxu0 %v4051_v54  ;;  %2794 = vmatprep.subr.bf16.mxu1 %v4054_v55  ;;  %v4136_v54 = vld [vmem:[#allocation5 + $0x5b8] ss:$36 sps:$4 sm:$0xff]   ;;  %v4144_v55 = vld [vmem:[#allocation5 + $0x604] ss:$36 sps:$4 sm:$0xff]  }
 0x118   : > { %2666 = vmatpush1.bf16.msra.mxu0 %v4049_v56  ;;  %2795 = vmatpush1.bf16.msra.mxu1 %v4052_v57  ;;  %v4139_v56 = vld [vmem:[#allocation5 + $0x5f8] ss:$36 sps:$4 sm:$0xff]   ;;  %v4142_v57 = vld [vmem:[#allocation5 + $0x600] ss:$36 sps:$4 sm:$0xff]  }
 0x119   : > { %2667 = vmatprep.subr.bf16.mxu0 %v4057_v58  ;;  %2796 = vmatprep.subr.bf16.mxu1 %v4060_v59  ;;  %v4147_v58 = vld [vmem:[#allocation5 + $0x644] ss:$36 sps:$4 sm:$0xff]   ;;  %v4150_v59 = vld [vmem:[#allocation5 + $0x64c] ss:$36 sps:$4 sm:$0xff]  }
 0x11c   : > { %2668 = vmatpush1.bf16.msra.mxu0 %v4055_v60  ;;  %2797 = vmatpush1.bf16.msra.mxu1 %v4058_v61  ;;  %v4145_v60 = vld [vmem:[#allocation5 + $0x640] ss:$36 sps:$4 sm:$0xff]   ;;  %v4148_v61 = vld [vmem:[#allocation5 + $0x648] ss:$36 sps:$4 sm:$0xff]  }
 0x11d   : > { %2669 = vmatprep.subr.bf16.mxu0 %v4063_v62  ;;  %2798 = vmatprep.subr.bf16.mxu1 %v4066_v63  ;;  %v4153_v62 = vld [vmem:[#allocation5 + $0x68c] ss:$36 sps:$4 sm:$0xff]   ;;  %v4156_v63 = vld [vmem:[#allocation5 + $0x694] ss:$36 sps:$4 sm:$0xff]  }
 0x120   : > { %2670 = vmatpush1.bf16.msra.mxu0 %v4061_v0  ;;  %2799 = vmatpush1.bf16.msra.mxu1 %v4064_v1  ;;  %v4151_v0 = vld [vmem:[#allocation5 + $0x688] ss:$36 sps:$4 sm:$0xff]   ;;  %v4154_v1 = vld [vmem:[#allocation5 + $0x690] ss:$36 sps:$4 sm:$0xff]  }
 0x121   : > { %2671 = vmatprep.subr.bf16.mxu0 %v4069_v2  ;;  %2800 = vmatprep.subr.bf16.mxu1 %v4072_v3  ;;  %v4159_v2 = vld [vmem:[#allocation5 + $0x6d4] ss:$36 sps:$4 sm:$0xff]   ;;  %v4162_v3 = vld [vmem:[#allocation5 + $0x6dc] ss:$36 sps:$4 sm:$0xff]  }
 0x124   : > { %2672 = vmatpush1.bf16.msra.mxu0 %v4067_v4  ;;  %2801 = vmatpush1.bf16.msra.mxu1 %v4070_v5  ;;  %v4157_v4 = vld [vmem:[#allocation5 + $0x6d0] ss:$36 sps:$4 sm:$0xff]   ;;  %v4160_v5 = vld [vmem:[#allocation5 + $0x6d8] ss:$36 sps:$4 sm:$0xff]  }
 0x125   : > { %2673 = vmatprep.subr.bf16.mxu0 %v4075_v6  ;;  %2802 = vmatprep.subr.bf16.mxu1 %v4078_v7  ;;  %v4165_v6 = vld [vmem:[#allocation5 + $0x71c] ss:$36 sps:$4 sm:$0xff]   ;;  %v4168_v7 = vld [vmem:[#allocation5 + $0x724] ss:$36 sps:$4 sm:$0xff]  }
 0x128   : > { %2674 = vmatpush1.bf16.msra.mxu0 %v4073_v9  ;;  %2803 = vmatpush1.bf16.msra.mxu1 %v4076_v10  ;;  %v4163_v9 = vld [vmem:[#allocation5 + $0x718] ss:$36 sps:$4 sm:$0xff]   ;;  %v4166_v10 = vld [vmem:[#allocation5 + $0x720] ss:$36 sps:$4 sm:$0xff]  }
 0x129   : > { %2675 = vmatprep.subr.bf16.mxu0 %v4081_v11  ;;  %2804 = vmatprep.subr.bf16.mxu1 %v4084_v12  ;;  %v4171_v11 = vld [vmem:[#allocation5 + $0x764] ss:$36 sps:$4 sm:$0xff]   ;;  %v4174_v12 = vld [vmem:[#allocation5 + $0x76c] ss:$36 sps:$4 sm:$0xff]  }
 0x12c   : > { %2676 = vmatpush1.bf16.msra.mxu0 %v4079_v13  ;;  %2805 = vmatpush1.bf16.msra.mxu1 %v4082_v14  ;;  %v4169_v13 = vld [vmem:[#allocation5 + $0x760] ss:$36 sps:$4 sm:$0xff]   ;;  %v4172_v14 = vld [vmem:[#allocation5 + $0x768] ss:$36 sps:$4 sm:$0xff]  }
 0x12d   : > { %2677 = vmatprep.subr.bf16.mxu0 %v4087_v16  ;;  %2806 = vmatprep.subr.bf16.mxu1 %v4090_v17  ;;  %v4177_v16 = vld [vmem:[#allocation5 + $0x7ac] ss:$36 sps:$4 sm:$0xff]   ;;  %v4180_v17 = vld [vmem:[#allocation5 + $0x7b4] ss:$36 sps:$4 sm:$0xff]  }
 0x130   : > { %2678 = vmatpush1.bf16.msra.mxu0 %v4085_v18  ;;  %2807 = vmatpush1.bf16.msra.mxu1 %v4088_v19  ;;  %v4175_v18 = vld [vmem:[#allocation5 + $0x7a8] ss:$36 sps:$4 sm:$0xff]   ;;  %v4178_v19 = vld [vmem:[#allocation5 + $0x7b0] ss:$36 sps:$4 sm:$0xff]  }
 0x131   : > { %2679 = vmatprep.subr.bf16.mxu0 %v4093_v20  ;;  %2808 = vmatprep.subr.bf16.mxu1 %v4096_v21  ;;  %v4183_v20 = vld [vmem:[#allocation5 + $0x7f4] ss:$36 sps:$4 sm:$0xff]   ;;  %v4186_v21 = vld [vmem:[#allocation5 + $0x7fc] ss:$36 sps:$4 sm:$0xff]  }
 0x134   : > { %2680 = vmatpush1.bf16.msra.mxu0 %v4091_v22  ;;  %2809 = vmatpush1.bf16.msra.mxu1 %v4094_v23  ;;  %v4181_v22 = vld [vmem:[#allocation5 + $0x7f0] ss:$36 sps:$4 sm:$0xff]   ;;  %v4184_v23 = vld [vmem:[#allocation5 + $0x7f8] ss:$36 sps:$4 sm:$0xff]  }
 0x135   : > { %2681 = vmatprep.subr.bf16.mxu0 %v4099_v24  ;;  %2810 = vmatprep.subr.bf16.mxu1 %v4102_v25  ;;  %v4189_v24 = vld [vmem:[#allocation5 + $0x83c] ss:$36 sps:$4 sm:$0xff]   ;;  %v4192_v25 = vld [vmem:[#allocation5 + $0x844] ss:$36 sps:$4 sm:$0xff]  }
 0x138   : > { %2682 = vmatpush1.bf16.msra.mxu0 %v4097_v26  ;;  %2811 = vmatpush1.bf16.msra.mxu1 %v4100_v27  ;;  %v4187_v26 = vld [vmem:[#allocation5 + $0x838] ss:$36 sps:$4 sm:$0xff]   ;;  %v4190_v27 = vld [vmem:[#allocation5 + $0x840] ss:$36 sps:$4 sm:$0xff]  }
 0x139   : > { %2683 = vmatprep.subr.bf16.mxu0 %v4105_v28  ;;  %2812 = vmatprep.subr.bf16.mxu1 %v4108_v30  ;;  %v4195_v28 = vld [vmem:[#allocation5 + $0x884] ss:$36 sps:$4 sm:$0xff]   ;;  %v4198_v30 = vld [vmem:[#allocation5 + $0x88c] ss:$36 sps:$4 sm:$0xff]  }
 0x13c   : > { %2684 = vmatpush1.bf16.msra.mxu0 %v4103_v32  ;;  %2813 = vmatpush1.bf16.msra.mxu1 %v4106_v33  ;;  %v4193_v32 = vld [vmem:[#allocation5 + $0x880] ss:$36 sps:$4 sm:$0xff]   ;;  %v4196_v33 = vld [vmem:[#allocation5 + $0x888] ss:$36 sps:$4 sm:$0xff]  }
 0x13d   : > { %2696 = vmatprep.subr.bf16.mxu0 %v4111_v34  ;;  %2825 = vmatprep.subr.bf16.mxu1 %v4114_v35  ;;  %v4201_v34 = vld [vmem:[#allocation5 + $0x8cc] ss:$36 sps:$4 sm:$0xff]   ;;  %v4204_v35 = vld [vmem:[#allocation5 + $0x8d4] ss:$36 sps:$4 sm:$0xff]  }
 0x13f   : > { %2686 = vmatmul.mubr.bf16.vlgmr.msra.gmra.mrb[4].mxu0 %v4687_v41  ;;  %2815 = vmatmul.mubr.bf16.vlgmr.msra.gmra.mrb[4].mxu1 %v4687_v41 }
 0x140   : > { %2697 = vmatpush1.bf16.msra.mxu0 %v4109_v36  ;;  %2826 = vmatpush1.bf16.msra.mxu1 %v4112_v37  ;;  %v4199_v36 = vld [vmem:[#allocation5 + $0x8c8] ss:$36 sps:$4 sm:$0xff]   ;;  %v4202_v37 = vld [vmem:[#allocation5 + $0x8d0] ss:$36 sps:$4 sm:$0xff]  }
 0x141   : > { %2698 = vmatprep.subr.bf16.mxu0 %v4117_v38  ;;  %2827 = vmatprep.subr.bf16.mxu1 %v4120_v39  ;;  %v4207_v38 = vld [vmem:[#allocation5 + $0x914] ss:$36 sps:$4 sm:$0xff]   ;;  %v4210_v39 = vld [vmem:[#allocation5 + $0x91c] ss:$36 sps:$4 sm:$0xff]  }
 0x142   : > { %2728 = vmatprep.mubr.bf16.mxu0 %v4662_v29  ;;  %2857 = vmatprep.mubr.bf16.mxu1 %v4662_v29  ;;  %v4141_v29 = vld [vmem:[#allocation5 + $0x5fc] ss:$36 sps:$4 sm:$0xff]  }
 0x144   : > { %2699 = vmatpush1.bf16.msra.mxu0 %v4115_v40  ;;  %2828 = vmatpush1.bf16.msra.mxu1 %v4118_v42  ;;  %v4205_v40 = vld [vmem:[#allocation5 + $0x910] ss:$36 sps:$4 sm:$0xff]   ;;  %v4208_v42 = vld [vmem:[#allocation5 + $0x918] ss:$36 sps:$4 sm:$0xff]  }
 0x145   : > { %2700 = vmatprep.subr.bf16.mxu0 %v4123_v43  ;;  %2829 = vmatprep.subr.bf16.mxu1 %v4126_v44  ;;  %v4213_v43 = vld [vmem:[#allocation5 + $0x95c] ss:$36 sps:$4 sm:$0xff]   ;;  %v4216_v44 = vld [vmem:[#allocation5 + $0x964] ss:$36 sps:$4 sm:$0xff]  }
 0x148   : > { %2701 = vmatpush1.bf16.msra.mxu0 %v4121_v45  ;;  %2830 = vmatpush1.bf16.msra.mxu1 %v4124_v46  ;;  %v4211_v45 = vld [vmem:[#allocation5 + $0x958] ss:$36 sps:$4 sm:$0xff]   ;;  %v4214_v46 = vld [vmem:[#allocation5 + $0x960] ss:$36 sps:$4 sm:$0xff]  }
 0x149   : > { %2702 = vmatprep.subr.bf16.mxu0 %v4129_v48  ;;  %2831 = vmatprep.subr.bf16.mxu1 %v4132_v49  ;;  %v4219_v48 = vld [vmem:[#allocation5 + $0x9a4] ss:$36 sps:$4 sm:$0xff]   ;;  %v4222_v49 = vld [vmem:[#allocation5 + $0x9ac] ss:$36 sps:$4 sm:$0xff]  }
 0x14c   : > { %2703 = vmatpush1.bf16.msra.mxu0 %v4127_v50  ;;  %2832 = vmatpush1.bf16.msra.mxu1 %v4130_v47  ;;  %v4217_v50 = vld [vmem:[#allocation5 + $0x9a0] ss:$36 sps:$4 sm:$0xff]   ;;  %v4220_v47 = vld [vmem:[#allocation5 + $0x9a8] ss:$36 sps:$4 sm:$0xff]  }
 0x14d   : > { %2704 = vmatprep.subr.bf16.mxu0 %v4135_v51  ;;  %2833 = vmatprep.subr.bf16.mxu1 %v4138_v52  ;;  %v4225_v51 = vld [vmem:[#allocation5 + $0x9ec] ss:$36 sps:$4 sm:$0xff]  }
 0x14e   : > { %v4223_v52 = vld [vmem:[#allocation5 + $0x9e8] ss:$36 sps:$4 sm:$0xff]  }
 0x150   : > { %2705 = vmatpush1.bf16.msra.mxu0 %v4133_v53  ;;  %2834 = vmatpush1.bf16.msra.mxu1 %v4136_v54  ;;  %v4226_v53 = vld [vmem:[#allocation5 + $0x9f0] ss:$36 sps:$4 sm:$0xff]  }
 0x151   : > { %2706 = vmatprep.subr.bf16.mxu0 %v4141_v29  ;;  %2835 = vmatprep.subr.bf16.mxu1 %v4144_v55  ;;  %v4229_v54 = vld [vmem:[#allocation5 + $0xa34] ss:$36 sps:$4 sm:$0x3f]   ;;  %v4231_v29 = vld [vmem:[#allocation5 + $0xa3c] ss:$36 sps:$4 sm:$0x3f]  }
 0x152   : > { %v4233_v55 = vld [vmem:[#allocation5 + $0xa30] ss:$36 sps:$4 sm:$0x3f]  }
 0x154   : > { %2707 = vmatpush1.bf16.msra.mxu0 %v4139_v56  ;;  %2836 = vmatpush1.bf16.msra.mxu1 %v4142_v57  ;;  %v4234_v56 = vld [vmem:[#allocation5 + $0xa38] ss:$36 sps:$4 sm:$0x3f]  }
 0x155   : > { %2708 = vmatprep.subr.bf16.mxu0 %v4147_v58  ;;  %2837 = vmatprep.subr.bf16.mxu1 %v4150_v59  ;;  %v2387_v57 = vsel %vm2367_vm0, %v4234_v56, 0  ;;  %v4235_v58 = vld [vmem:[#allocation5 + $0x260] ss:$36 sps:$4 sm:$0xff]  }
 0x156   : > { %v4237_v59 = vld [vmem:[#allocation5 + $0x6e0] ss:$36 sps:$4 sm:$0xff]  }
 0x158   : > { %2709 = vmatpush1.bf16.msra.mxu0 %v4145_v60  ;;  %2838 = vmatpush1.bf16.msra.mxu1 %v4148_v61  ;;  %v4236_v60 = vld [vmem:[#allocation5 + $0x20] ss:$36 sps:$4 sm:$0xff]  }
 0x159   : > { %2710 = vmatprep.subr.bf16.mxu0 %v4153_v62  ;;  %2839 = vmatprep.subr.bf16.mxu1 %v4156_v63  ;;  %v4238_v61 = vld [vmem:[#allocation5 + $0x4a0] ss:$36 sps:$4 sm:$0xff]   ;;  %v4239_v62 = vld [vmem:[#allocation5 + $0x2a8] ss:$36 sps:$4 sm:$0xff]  }
 0x15a   : > { %v4241_v63 = vld [vmem:[#allocation5 + $0x728] ss:$36 sps:$4 sm:$0xff]  }
 0x15c   : > { %2711 = vmatpush1.bf16.msra.mxu0 %v4151_v0  ;;  %2840 = vmatpush1.bf16.msra.mxu1 %v4154_v1  ;;  %v4240_v0 = vld [vmem:[#allocation5 + $0x68] ss:$36 sps:$4 sm:$0xff]  }
 0x15d   : > { %2712 = vmatprep.subr.bf16.mxu0 %v4159_v2  ;;  %2841 = vmatprep.subr.bf16.mxu1 %v4162_v3  ;;  %v4242_v1 = vld [vmem:[#allocation5 + $0x4e8] ss:$36 sps:$4 sm:$0xff]   ;;  %v4243_v2 = vld [vmem:[#allocation5 + $0x2f0] ss:$36 sps:$4 sm:$0xff]  }
 0x15e   : > { %v4245_v3 = vld [vmem:[#allocation5 + $0x770] ss:$36 sps:$4 sm:$0xff]  }
 0x160   : > { %2713 = vmatpush1.bf16.msra.mxu0 %v4157_v4  ;;  %2842 = vmatpush1.bf16.msra.mxu1 %v4160_v5  ;;  %v4273_v4 = vld [vmem:[%s4645_s4 + $0x4] ss:$20 sps:$4 sm:$0xff]   ;;  %v4274_v5 = vld [vmem:[%s4645_s4 + $0xc] ss:$20 sps:$4 sm:$0xff]  }
 0x161   : > { %2714 = vmatprep.subr.bf16.mxu0 %v4165_v6  ;;  %2843 = vmatprep.subr.bf16.mxu1 %v4168_v7  ;;  %v4244_v6 = vld [vmem:[#allocation5 + $0xb0] ss:$36 sps:$4 sm:$0xff]  }
 0x162   : > { %v4246_v7 = vld [vmem:[#allocation5 + $0x530] ss:$36 sps:$4 sm:$0xff]  }
 0x164   : > { %2715 = vmatpush1.bf16.msra.mxu0 %v4163_v9  ;;  %2844 = vmatpush1.bf16.msra.mxu1 %v4166_v10  ;;  %v4247_v9 = vld [vmem:[#allocation5 + $0x338] ss:$36 sps:$4 sm:$0xff]  }
 0x165   : > { %2716 = vmatprep.subr.bf16.mxu0 %v4171_v11  ;;  %2845 = vmatprep.subr.bf16.mxu1 %v4174_v12  ;;  %v4248_v10 = vld [vmem:[#allocation5 + $0xf8] ss:$36 sps:$4 sm:$0xff]   ;;  %v4251_v12 = vld [vmem:[#allocation5 + $0x380] ss:$36 sps:$4 sm:$0xff]  }
 0x166   : > { %v4250_v11 = vld [vmem:[#allocation5 + $0x578] ss:$36 sps:$4 sm:$0xff]  }
 0x168   : > { %2717 = vmatpush1.bf16.msra.mxu0 %v4169_v13  ;;  %2846 = vmatpush1.bf16.msra.mxu1 %v4172_v14  ;;  %v4253_v13 = vld [vmem:[#allocation5 + $0x800] ss:$36 sps:$4 sm:$0xff]  }
 0x169   : > { %2718 = vmatprep.subr.bf16.mxu0 %v4177_v16  ;;  %2847 = vmatprep.subr.bf16.mxu1 %v4180_v17  ;;  %v4252_v14 = vld [vmem:[#allocation5 + $0x140] ss:$36 sps:$4 sm:$0xff]   ;;  %v4255_v17 = vld [vmem:[#allocation5 + $0x3c8] ss:$36 sps:$4 sm:$0xff]  }
 0x16a   : > { %v4254_v16 = vld [vmem:[#allocation5 + $0x5c0] ss:$36 sps:$4 sm:$0xff]  }
 0x16c   : > { %2719 = vmatpush1.bf16.msra.mxu0 %v4175_v18  ;;  %2848 = vmatpush1.bf16.msra.mxu1 %v4178_v19  ;;  %v4257_v18 = vld [vmem:[#allocation5 + $0x848] ss:$36 sps:$4 sm:$0xff]  }
 0x16d   : > { %2720 = vmatprep.subr.bf16.mxu0 %v4183_v20  ;;  %2849 = vmatprep.subr.bf16.mxu1 %v4186_v21  ;;  %v4256_v19 = vld [vmem:[#allocation5 + $0x188] ss:$36 sps:$4 sm:$0xff]   ;;  %v4259_v21 = vld [vmem:[#allocation5 + $0x410] ss:$36 sps:$4 sm:$0xff]  }
 0x16e   : > { %v4258_v20 = vld [vmem:[#allocation5 + $0x608] ss:$36 sps:$4 sm:$0xff]  }
 0x170   : > { %2721 = vmatpush1.bf16.msra.mxu0 %v4181_v22  ;;  %2850 = vmatpush1.bf16.msra.mxu1 %v4184_v23  ;;  %v4261_v22 = vld [vmem:[#allocation5 + $0x890] ss:$36 sps:$4 sm:$0xff]  }
 0x171   : > { %2722 = vmatprep.subr.bf16.mxu0 %v4189_v24  ;;  %2851 = vmatprep.subr.bf16.mxu1 %v4192_v25  ;;  %v4260_v23 = vld [vmem:[#allocation5 + $0x1d0] ss:$36 sps:$4 sm:$0xff]   ;;  %v4263_v25 = vld [vmem:[#allocation5 + $0x458] ss:$36 sps:$4 sm:$0xff]  }
 0x172   : > { %v4262_v24 = vld [vmem:[#allocation5 + $0x650] ss:$36 sps:$4 sm:$0xff]  }
 0x174   : > { %2723 = vmatpush1.bf16.msra.mxu0 %v4187_v26  ;;  %2852 = vmatpush1.bf16.msra.mxu1 %v4190_v27  ;;  %v4265_v26 = vld [vmem:[#allocation5 + $0x8d8] ss:$36 sps:$4 sm:$0xff]  }
 0x175   : > { %2724 = vmatprep.subr.bf16.mxu0 %v4195_v28  ;;  %2853 = vmatprep.subr.bf16.mxu1 %v4198_v30  ;;  %v4264_v27 = vld [vmem:[#allocation5 + $0x218] ss:$36 sps:$4 sm:$0xff]   ;;  %v4267_v30 = vld [vmem:[#allocation5 + $0x920] ss:$36 sps:$4 sm:$0xff]  }
 0x176   : > { %v4266_v28 = vld [vmem:[#allocation5 + $0x698] ss:$36 sps:$4 sm:$0xff]  }
 0x178   : > { %2725 = vmatpush1.bf16.msra.mxu0 %v4193_v32  ;;  %2854 = vmatpush1.bf16.msra.mxu1 %v4196_v33  ;;  %v4443_v32 = vmov 0.0   ;;  %v4275_v33 = vld [vmem:[%s4645_s4 + $0x8] ss:$20 sps:$4 sm:$0xff]  }
 0x179   : > { %2726 = vmatprep.subr.bf16.mxu0 %v4201_v34  ;;  %2855 = vmatprep.subr.bf16.mxu1 %v4204_v35  ;;  %v4268_v34 = vld [vmem:[#allocation5 + $0x968] ss:$36 sps:$4 sm:$0xff]   ;;  %v4269_v35 = vld [vmem:[#allocation5 + $0x9b0] ss:$36 sps:$4 sm:$0xff]  }
 0x17c   : > { %2727 = vmatpush1.bf16.msra.mxu0 %v4199_v36  ;;  %2856 = vmatpush1.bf16.msra.mxu1 %v4202_v37  ;;  %v4270_v36 = vld [vmem:[#allocation5 + $0x9f8] ss:$36 sps:$4 sm:$0xff]   ;;  %v4271_v37 = vld [vmem:[#allocation5 + $0xa40] ss:$36 sps:$4 sm:$0x3f]  }
 0x17d   : > { %2739 = vmatprep.subr.bf16.mxu0 %v4207_v38  ;;  %2868 = vmatprep.subr.bf16.mxu1 %v4210_v39  ;;  %v600_v38 = vlaneseq  ;;  %v4276_v39 = vld [vmem:[%s4645_s4 + $0x10] ss:$20 sps:$4 sm:$0xff]  }
 0x17f   : > { %2729 = vmatmul.mubr.bf16.vlgmr.msra.gmra.mrb[4].mxu0 %v4667_v8  ;;  %2858 = vmatmul.mubr.bf16.vlgmr.msra.gmra.mrb[4].mxu1 %v4667_v8  ;;  %v4228_v8 = vld [vmem:[#allocation5 + $0x9f4] ss:$36 sps:$4 sm:$0xff]  }
 0x180   : > { %2740 = vmatpush1.bf16.msra.mxu0 %v4205_v40  ;;  %2869 = vmatpush1.bf16.msra.mxu1 %v4208_v42  ;;  %v601_v40 = vshrl.u32 %v600_v38, 7 }
 0x181   : > { %2741 = vmatprep.subr.bf16.mxu0 %v4213_v43  ;;  %2870 = vmatprep.subr.bf16.mxu1 %v4216_v44  ;;  %v596_v44 = vld [vmem:[#allocation7] sm:$0xff] }
 0x182   : > { %2771 = vmatprep.mubr.bf16.mxu0 %v4442_v15  ;;  %2900 = vmatprep.mubr.bf16.mxu1 %v4442_v15  ;;  %v2381_v15 = vsel %vm2367_vm0, %v4233_v55, 0  ;;  %v602_v42 = vsub.s32 0, %v601_v40  ;;  %v610_v43 = vsub.s32 2, %v601_v40 }
 0x184   : > { %2742 = vmatpush1.bf16.msra.mxu0 %v4211_v45  ;;  %2871 = vmatpush1.bf16.msra.mxu1 %v4214_v46  ;;  %v606_v45 = vsub.s32 1, %v601_v40  ;;  %v614_v46 = vsub.s32 3, %v601_v40 }
 0x185   : > { %2743 = vmatprep.subr.bf16.mxu0 %v4219_v48  ;;  %2872 = vmatprep.subr.bf16.mxu1 %v4222_v49  ;;  %v603_v48 = vrot.slane %v596_v44, %v602_v42  ;;  %v611_v49 = vrot.slane %v596_v44, %v610_v43 }
 0x188   : > { %2744 = vmatpush1.bf16.msra.mxu0 %v4217_v50  ;;  %2873 = vmatpush1.bf16.msra.mxu1 %v4220_v47  ;;  %v607_v50 = vrot.slane %v596_v44, %v606_v45  ;;  %v615_v47 = vrot.slane %v596_v44, %v614_v46 }
 0x189   : > { %2745 = vmatprep.subr.bf16.mxu0 %v4225_v51  ;;  %2874 = vmatprep.subr.bf16.mxu1 %v4228_v8 }
 0x18c   : > { %2746 = vmatpush1.bf16.msra.mxu0 %v4223_v52  ;;  %2875 = vmatpush1.bf16.msra.mxu1 %v4226_v53 }
 0x18d   : > { %3561 = vmatprep.subr.msk.bf16.mxu0 %vm2367_vm0, %v4229_v54  ;;  %3563 = vmatprep.subr.msk.bf16.mxu1 %vm2367_vm0, %v4231_v29 }
 0x190   : > { %2748 = vmatpush1.bf16.msra.mxu0 %v2381_v15  ;;  %2877 = vmatpush1.bf16.msra.mxu1 %v2387_v57 }
 0x191   : > { %3591 = vmatprep.subr.bf16.mxu0 %v4235_v58  ;;  %3613 = vmatprep.subr.bf16.mxu1 %v4237_v59 }
 0x193   : > { %3562 = vmatmul.mubr.msk.bf16.vlgmr.msra.gmra.mrb[4].mxu0 %vm2363_vm1, %v4678_v31  ;;  %3564 = vmatmul.mubr.msk.bf16.vlgmr.msra.gmra.mrb[4].mxu1 %vm2363_vm1, %v4678_v31  ;;  %v4249_v31 = vld [vmem:[#allocation5 + $0x7b8] ss:$36 sps:$4 sm:$0xff]  }
 0x194   : > { %3592 = vmatpush3.bf16.msra.mxu0 %v4236_v60  ;;  %3614 = vmatpush3.bf16.msra.mxu1 %v4238_v61 }
 0x195   : > { %3593 = vmatprep.subr.bf16.mxu0 %v4239_v62  ;;  %3615 = vmatprep.subr.bf16.mxu1 %v4241_v63 }
 0x196   : > { %2943 = vmatprep.mubr.bf16.mxu0 %v4273_v4  ;;  %2984 = vmatprep.mubr.bf16.mxu1 %v4274_v5  ;;  %v618_v4 = vsub.s32 4, %v601_v40  ;;  %v626_v5 = vsub.s32 6, %v601_v40 }
 0x198   : > { %3594 = vmatpush3.bf16.msra.mxu0 %v4240_v0  ;;  %3616 = vmatpush3.bf16.msra.mxu1 %v4242_v1 }
 0x199   : > { %3595 = vmatprep.subr.bf16.mxu0 %v4243_v2  ;;  %3617 = vmatprep.subr.bf16.mxu1 %v4245_v3 }
 0x19c   : > { %3596 = vmatpush3.bf16.msra.mxu0 %v4244_v6  ;;  %3618 = vmatpush3.bf16.msra.mxu1 %v4246_v7  ;;  %v622_v6 = vsub.s32 5, %v601_v40  ;;  %v630_v7 = vsub.s32 7, %v601_v40 }
 0x19d   : > { %3597 = vmatprep.subr.bf16.mxu0 %v4247_v9  ;;  %3619 = vmatprep.subr.bf16.mxu1 %v4249_v31  ;;  %v619_v9 = vrot.slane %v596_v44, %v618_v4  ;;  %v627_v31 = vrot.slane %v596_v44, %v626_v5 }
 0x1a0   : > { %3598 = vmatpush3.bf16.msra.mxu0 %v4248_v10  ;;  %3620 = vmatpush3.bf16.msra.mxu1 %v4250_v11  ;;  %v623_v10 = vrot.slane %v596_v44, %v622_v6  ;;  %v631_v11 = vrot.slane %v596_v44, %v630_v7 }
 0x1a1   : > { %3599 = vmatprep.subr.bf16.mxu0 %v4251_v12  ;;  %3621 = vmatprep.subr.bf16.mxu1 %v4253_v13 }
 0x1a4   : > { %3600 = vmatpush3.bf16.msra.mxu0 %v4252_v14  ;;  %3622 = vmatpush3.bf16.msra.mxu1 %v4254_v16 }
 0x1a5   : > { %3601 = vmatprep.subr.bf16.mxu0 %v4255_v17  ;;  %3623 = vmatprep.subr.bf16.mxu1 %v4257_v18 }
 0x1a8   : > { %3602 = vmatpush3.bf16.msra.mxu0 %v4256_v19  ;;  %3624 = vmatpush3.bf16.msra.mxu1 %v4258_v20 }
 0x1a9   : > { %3603 = vmatprep.subr.bf16.mxu0 %v4259_v21  ;;  %3625 = vmatprep.subr.bf16.mxu1 %v4261_v22 }
 0x1ac   : > { %3604 = vmatpush3.bf16.msra.mxu0 %v4260_v23  ;;  %3626 = vmatpush3.bf16.msra.mxu1 %v4262_v24 }
 0x1ad   : > { %3605 = vmatprep.subr.bf16.mxu0 %v4263_v25  ;;  %3627 = vmatprep.subr.bf16.mxu1 %v4265_v26 }
 0x1b0   : > { %3606 = vmatpush3.bf16.msra.mxu0 %v4264_v27  ;;  %3628 = vmatpush3.bf16.msra.mxu1 %v4266_v28 }
 0x1b1   : > { %3641 = vmatprep.subr.bf16.mxu0 %v4443_v32 }
 0x1b3   : > { %2944 = vmatmul.mubr.bf16.vlgmr.msra.gmra.mrb[8].mxu0 %v4687_v41  ;;  %2985 = vmatmul.mubr.bf16.vlgmr.msra.gmra.mrb[8].mxu1 %v4275_v33  ;;  %v2393_v41 = vsel %vm2367_vm0, %v4271_v37, 0  ;;  %v3218_v37 = vld [vmem:[#allocation7 + $0x8] ss:$0 sm:$0xff] }
 0x1b4   : > { %3642 = vmatpush3.bf16.msra.mxu0 %v4267_v30  ;;  %3651 = vmatprep.mubr.msk.bf16.mxu0 %vm4444_vm2, %v4443_v32 }
 0x1b5   : > { %3643 = vmatprep.subr.bf16.mxu0 %v4443_v32 }
 0x1b8   : > { %3644 = vmatpush3.bf16.msra.mxu0 %v4268_v34 }
 0x1b9   : > { %3645 = vmatprep.subr.bf16.mxu0 %v4443_v32 }
 0x1bc   : > { %3646 = vmatpush3.bf16.msra.mxu0 %v4269_v35 }
 0x1bd   : > { %3647 = vmatprep.subr.bf16.mxu0 %v4443_v32 }
 0x1c0   : > { %3648 = vmatpush3.bf16.msra.mxu0 %v4270_v36 }
 0x1c1   : > { %3649 = vmatprep.subr.bf16.mxu0 %v4443_v32 }
 0x1c4   : > { %3650 = vmatpush3.bf16.msra.mxu0 %v2393_v41 }
 0x1c7   : > { %3652 = vmatmul.mubr.msk.bf16.vlgmr.msra.gmra.mrb[12].mxu0 %vm2363_vm1, %v4276_v39 }
 0x1d2   : > { %v2515_v51 = vpop.f32.mrb[0].mxu0  ;;  %v2644_v8 = vpop.f32.mrb[0].mxu1 }
 0x1d3   : > { %v3655_v52 = vadd.f32 %v2515_v51, %v603_v48  ;;  %v3659_v53 = vadd.f32 %v2644_v8, %v611_v49  ;;  %v2517_v54 = vpop.f32.mrb[1].mxu0  ;;  %v2646_v29 = vpop.f32.mrb[1].mxu1 }
 0x1d4   : > { %v3656_v55 = vadd.f32 %v2517_v54, %v607_v50  ;;  %v3660_v56 = vadd.f32 %v2646_v29, %v615_v47  ;;  %v2519_v15 = vpop.f32.mrb[2].mxu0  ;;  %v2648_v57 = vpop.f32.mrb[2].mxu1 }
 0x1d5   : > { %v3657_v58 = vadd.f32 %v2519_v15, %v603_v48  ;;  %v3661_v59 = vadd.f32 %v2648_v57, %v611_v49  ;;  %v2521_v60 = vpop.f32.mrb[3].mxu0  ;;  %v2650_v61 = vpop.f32.mrb[3].mxu1 }
 0x1d6   : > { %v3581_v62 = vpack.c.bf16 %v3656_v55, %v3655_v52  ;;  %v3582_v63 = vpack.c.bf16 %v3660_v56, %v3659_v53  ;;  %v3658_v0 = vadd.f32 %v2521_v60, %v607_v50  ;;  %v3662_v1 = vadd.f32 %v2650_v61, %v615_v47 }
 0x1d8   : > { %3090 = vst [vmem:[%s4713_s20] sm:$0xff] %v3581_v62  ;;  %3091 = vst [vmem:[%s4713_s20 + $0x8] sm:$0xff] %v3582_v63  ;;  %v3586_v2 = vpack.c.bf16 %v3658_v0, %v3657_v58  ;;  %v3587_v3 = vpack.c.bf16 %v3662_v1, %v3661_v59 }
 0x1da   : > { %3095 = vst [vmem:[%s4713_s20 + $0x24] sm:$0xff] %v3586_v2  ;;  %3096 = vst [vmem:[%s4713_s20 + $0x2c] sm:$0xff] %v3587_v3 }
 0x266   : > { %v2773_v12 = vpop.f32.mrb[4].mxu0  ;;  %v2902_v13 = vpop.f32.mrb[4].mxu1 }
 0x267   : > { %v3663_v14 = vadd.f32 %v2773_v12, %v619_v9  ;;  %v3667_v16 = vadd.f32 %v2902_v13, %v627_v31  ;;  %v2775_v17 = vpop.f32.mrb[5].mxu0  ;;  %v2904_v18 = vpop.f32.mrb[5].mxu1 }
 0x268   : > { %v3664_v19 = vadd.f32 %v2775_v17, %v623_v10  ;;  %v3668_v20 = vadd.f32 %v2904_v18, %v631_v11  ;;  %v2777_v21 = vpop.f32.mrb[6].mxu0  ;;  %v2906_v22 = vpop.f32.mrb[6].mxu1 }
 0x269   : > { %v3665_v23 = vadd.f32 %v2777_v21, %v619_v9  ;;  %v3669_v24 = vadd.f32 %v2906_v22, %v627_v31  ;;  %v2779_v25 = vpop.f32.mrb[7].mxu0  ;;  %v2908_v26 = vpop.f32.mrb[7].mxu1 }
 0x26a   : > { %v3583_v27 = vpack.c.bf16 %v3664_v19, %v3663_v14  ;;  %v3584_v28 = vpack.c.bf16 %v3668_v20, %v3667_v16  ;;  %v3666_v30 = vadd.f32 %v2779_v25, %v623_v10  ;;  %v3670_v32 = vadd.f32 %v2908_v26, %v631_v11 }
 0x26c   : > { %3092 = vst [vmem:[%s4713_s20 + $0x10] sm:$0xff] %v3583_v27  ;;  %3093 = vst [vmem:[%s4713_s20 + $0x18] sm:$0xff] %v3584_v28  ;;  %v3588_v33 = vpack.c.bf16 %v3666_v30, %v3665_v23  ;;  %v3589_v34 = vpack.c.bf16 %v3670_v32, %v3669_v24 }
 0x26e   : > { %3097 = vst [vmem:[%s4713_s20 + $0x34] sm:$0xff] %v3588_v33  ;;  %3098 = vst [vmem:[%s4713_s20 + $0x3c] sm:$0xff] %v3589_v34 }
 0x286   : > { %v3607_v35 = vpop.f32.mrb[8].mxu0  ;;  %v3629_v36 = vpop.f32.mrb[8].mxu1 }
 0x287   : > { %v3608_v41 = vpop.f32.mrb[9].mxu0  ;;  %v3630_v38 = vpop.f32.mrb[9].mxu1 }
 0x288   : > { %v3609_v39 = vadd.f32 %v3608_v41, %v3607_v35  ;;  %v3610_v40 = vpop.f32.mrb[10].mxu0  ;;  %v3631_v42 = vadd.f32 %v3630_v38, %v3629_v36  ;;  %v3632_v43 = vpop.f32.mrb[10].mxu1 }
 0x289   : > { %v3611_v44 = vpop.f32.mrb[11].mxu0  ;;  %v3633_v45 = vpop.f32.mrb[11].mxu1 }
 0x28a   : > { %v2946_v46 = vadd.f32 %v3609_v39, %v3218_v37  ;;  %v3612_v48 = vadd.f32 %v3611_v44, %v3610_v40  ;;  %v3634_v49 = vadd.f32 %v3633_v45, %v3632_v43 }
 0x28c   : > { %v2949_v50 = vadd.f32 %v3612_v48, %v3218_v37  ;;  %v2987_v47 = vadd.f32 %v3631_v42, %v2946_v46 }
 0x28e   : > { %v2990_v51 = vadd.f32 %v3634_v49, %v2949_v50 }
 0x29a   : > { %v3027_v8 = vpop.f32.mrb[12].mxu0 }
 0x29b   : > { %v3028_v52 = vadd.f32 %v3027_v8, %v2987_v47  ;;  %v3653_v53 = vpop.f32.mrb[13].mxu0 }
 0x29c   : > { %v3030_v54 = vpop.f32.mrb[14].mxu0 }
 0x29d   : > { %v3585_v29 = vpack.c.bf16 %v3028_v52, %v3028_v52  ;;  %v3031_v55 = vadd.f32 %v3030_v54, %v2990_v51  ;;  %v3654_v56 = vpop.f32.mrb[15].mxu0 }
 0x29f   : > { %3094 = vst [vmem:[%s4713_s20 + $0x20] sm:$0xf] %v3585_v29  ;;  %v3590_v15 = vpack.c.bf16 %v3031_v55, %v3031_v55 }
 0x2a1   : > { %3099 = vst [vmem:[%s4713_s20 + $0x44] sm:$0xf] %v3590_v15 }
 0x2a2   : > { %4376 = shalt.err (!%p4373_p2)
}
 0x2a3   : > { %s4377_s17 = scalar_lea.hbm %s4728_s23, 1152  ;;  %s4381_s29 = scalar_lea.hbm %s4779_s3, 2304 }
 0x2a4   : > { %p4378_p13 = scmp.ne.s32.totalorder %s4728_s23, %s4377_s17  ;;  %p4382_p4 = scmp.lt.u32.totalorder %s4728_s23, %s4779_s3 }
 0x2a5   : > { %p4383_p5 = scmp.lt.u32.totalorder %s4381_s29, %s4377_s17  ;;  %p4385_p11 = scmp.lt.u32.totalorder %s4377_s17, %s4728_s23 }
 0x2a6   : > { %p4379_p6 = pnand %p4378_p13, %p4793_p0 }
 0x2a7   : > { %p4384_p8 = por %p4383_p5, %p4382_p4 }
 0x2a8   : > { %p4380_p10 = pneg %p4379_p6 }
 0x2a9   : > { %p4386_p1 = por %p4385_p11, %p4384_p8 }
 0x2ab   : > { %p4387_p3 = pnand %p4386_p1, %p4380_p10 }
 0x2ad   : > { %4390 = shalt.err (!%p4387_p3)
}
 0x2ae   : > { %s4446_s18 = smov 576   ;;  %s4447_s20 = smov 36  }
 0x2af   : > { %3718 = dma.vmem_to_hbm [thread:$0]  (%p4793_p0), %s4730_s24, 1152, %s4728_s23, %s3101_s16, %s4446_s18, %s4446_s18, %s4447_s20  }
 0x2b0 PF: > { %s3130_s11 = sand.u32 1, %s4421_s12   ;;  %p4794_p7 = scmp.ne.s32.totalorder %s4784_s19, 0 }
 0x2b1   : > { %p4795_p9 = scmp.ge.s32.totalorder %s4433_s15, 2  ;;  %s3131_s27 = scalar_lea.sflag [#allocation4], %s3130_s11 }
 0x2b3   : > { %p3732_p12 = pnand %p4795_p9, %p4794_p7 }
 0x2b5   : > { %4416 = dma.done.wait (!%p3732_p12), %s3131_s27, 1152  }
 0x2b6   : > { %4418 = vsyncadd (!%p3732_p12), %s3131_s27, 4294966144  ;;  %p17_p2 = scmp.ge.s32.totalorder %s4579_s5, 4   ;;  %s4796_s12 = smov %s4425_s13 }
 0x2b7   : > { %s4797_s13 = smov %s4429_s14  ;;  %s4798_s14 = smov %s4595_s8 }
 0x2b8   : > { %s4799_s15 = smov %s4579_s5  ;;  %19 = sbr.rel (!%p17_p2) target bundleno = 6 (0x6), region = 85 }
 0x2bf   :  { %3136 = vsyncpa [#allocation3], 1 }
 0x2c0   :  { %3138 = vsyncpa [#allocation3 + $0x1], 1 }
 0x2c1   :  { %3139 = vsyncpa [#allocation6], 1 }
 0x2c2   :  { %3140 = vsyncpa [#allocation4], 1 }
 0x2c3   :  { %3142 = vsyncpa [#allocation4 + $0x1], 1 }

</bundles_post_ra>
